<compile_context>
chip_gen: v6e
topology: v6e:2x2x1
jax: 0.10.0
libtpu: 0.0.40
codegen_flags: <defaults>
</compile_context>

<pallas_src>
import math

import jax
import jax.numpy as jnp
from jax.experimental import pallas as pl
from jax.experimental.pallas import tpu as pltpu

# Small shapes implied by the module's forward (batch_first LSTM + classifier).
B = 2          # batch
B_PAD = 8      # batch padded to one full sublane tile
T = 8          # sequence length
I = 32         # input_size
H = 128        # hidden_size (lane-aligned: each gate = one 128-lane block)
G = 4 * H      # packed gate width (PyTorch order: i, f, g, o)
O = 8          # output_size (classifier)


def _sigmoid(x):
    # tanh identity: single EUP op + VPU mul/add; exact (no approx reciprocal).
    return 0.5 * jnp.tanh(0.5 * x) + 0.5


def lstm_kernel(x_ref, w_ref, bg_ref, wcls_ref, bcls_ref, o_ref, xg_ref):
    """Fused single-layer LSTM + last-step Linear classifier.

    x_ref    : (T*B_PAD, I) bf16  time-major rows (row t*B_PAD + b; b >= B is zero pad)
    w_ref    : (I+H, 4H)    bf16  rows [:I] = W_ih^T, rows [I:] = W_hh^T
    bg_ref   : (1, 4H)      f32   (bias_ih_l0 + bias_hh_l0)
    wcls_ref : (H, O)       bf16  (transposed classifier weight)
    bcls_ref : (1, O)       f32
    o_ref    : (B_PAD, O)   f32   (rows [B:] are padding, sliced off by the wrapper)
    xg_ref   : (T*B_PAD,4H) f32   VMEM scratch for the hoisted input projection
    """
    # Input projection for ALL timesteps & batch rows in a single MXU matmul;
    # spill to VMEM scratch so the recurrence re-loads one aligned slab/step.
    xg_ref[...] = jnp.dot(x_ref[...], w_ref[:I, :],
                          preferred_element_type=jnp.float32) + bg_ref[...]

    whh = w_ref[I:, :]                                     # (H, 4H) bf16, tile-aligned slice
    h = jnp.zeros((B_PAD, H), jnp.float32)
    c = jnp.zeros((B_PAD, H), jnp.float32)

    # Serial recurrence (statically unrolled, T is small). Only the tiny
    # h @ W_hh matmul lives inside the loop; every slab/gate slice is
    # sublane/lane tile-aligned.
    # TODO(synk): explicit MXU RHS staging (matmul_push_rhs/acc_lhs/pop) if the
    # bundle dump shows W_hh being re-pushed each iteration.
    for t in range(T):
        gates = xg_ref[t * B_PAD:(t + 1) * B_PAD, :] + jnp.dot(
            h.astype(jnp.bfloat16), whh, preferred_element_type=jnp.float32)
        i_g = _sigmoid(gates[:, 0 * H:1 * H])
        f_g = _sigmoid(gates[:, 1 * H:2 * H])
        g_g = jnp.tanh(gates[:, 2 * H:3 * H])
        o_g = _sigmoid(gates[:, 3 * H:4 * H])
        c = f_g * c + i_g * g_g
        h = o_g * jnp.tanh(c)

    # Classifier on the last hidden state (== out[:, -1, :] of the LSTM).
    o_ref[...] = jnp.dot(h.astype(jnp.bfloat16), wcls_ref[...],
                         preferred_element_type=jnp.float32) + bcls_ref[...]


def lstm_model(x, params):
    """x: (B, T, I) f32 -> (B, O) f32."""
    w_ih, w_hh, b_ih, b_hh, w_cls, b_cls = params

    # Time-major, batch padded to a full sublane tile, pre-cast to bf16 so each
    # per-step (B_PAD, I) slab is a whole aligned tile and no in-kernel cast.
    x_tb = jnp.transpose(x, (1, 0, 2))                               # (T, B, I)
    x_tb = jnp.pad(x_tb, ((0, 0), (0, B_PAD - B), (0, 0)))           # (T, B_PAD, I)
    x_tb = x_tb.reshape(T * B_PAD, I).astype(jnp.bfloat16)

    # Merge the two LSTM weight matrices into a single bf16 input (one DMA).
    w_merged = jnp.concatenate([w_ih, w_hh], axis=0).astype(jnp.bfloat16)  # (I+H, 4H)
    b_g = (b_ih + b_hh).reshape(1, G)

    def full(shape):
        return pl.BlockSpec(shape, lambda i, _n=len(shape): (0,) * _n)

    out_pad = pl.pallas_call(
        lstm_kernel,
        out_shape=jax.ShapeDtypeStruct((B_PAD, O), jnp.float32),
        grid_spec=pltpu.PrefetchScalarGridSpec(
            num_scalar_prefetch=0,
            grid=(1,),                       # single step: no per-batch grid overhead
            in_specs=[full((T * B_PAD, I)), full((I + H, G)),
                      full((1, G)), full((H, O)), full((1, O))],
            out_specs=full((B_PAD, O)),
            scratch_shapes=[pltpu.VMEM((T * B_PAD, G), jnp.float32)]),
        compiler_params=pltpu.CompilerParams(
            dimension_semantics=("arbitrary",)),
    )(x_tb, w_merged, b_g, w_cls.astype(jnp.bfloat16), b_cls)

    return out_pad[:B]


def make_params(rng):
    ks = jax.random.split(rng, 6)
    # LSTM weights get xavier_uniform_ in the module's __init__; torch stores
    # (4H, in) — we pass the transpose so the kernel computes x @ W.
    xa_ih = math.sqrt(6.0 / (G + I))
    xa_hh = math.sqrt(6.0 / (G + H))
    w_ih = jax.random.uniform(ks[0], (G, I), jnp.float32, -xa_ih, xa_ih).T   # (I, 4H)
    w_hh = jax.random.uniform(ks[1], (G, H), jnp.float32, -xa_hh, xa_hh).T   # (H, 4H)
    # LSTM biases keep torch's default init: uniform(+-1/sqrt(hidden_size)).
    bb = 1.0 / math.sqrt(H)
    b_ih = jax.random.uniform(ks[2], (G,), jnp.float32, -bb, bb)
    b_hh = jax.random.uniform(ks[3], (G,), jnp.float32, -bb, bb)
    # Classifier nn.Linear(hidden, output): default init uniform(+-1/sqrt(H)).
    w_cls = jax.random.uniform(ks[4], (O, H), jnp.float32, -bb, bb).T        # (H, O)
    b_cls = jax.random.uniform(ks[5], (1, O), jnp.float32, -bb, bb)
    return (w_ih, w_hh, b_ih, b_hh, w_cls, b_cls)


def reference(x, params):
    """Pure-JAX f32 reference of LSTMModelE.forward."""
    w_ih, w_hh, b_ih, b_hh, w_cls, b_cls = params
    hp = jax.lax.Precision.HIGHEST
    b_g = b_ih + b_hh
    h = jnp.zeros((B, H), jnp.float32)
    c = jnp.zeros((B, H), jnp.float32)
    for t in range(T):
        gates = (jnp.dot(x[:, t, :], w_ih, precision=hp)
                 + jnp.dot(h, w_hh, precision=hp) + b_g)
        i_g = jax.nn.sigmoid(gates[:, 0 * H:1 * H])
        f_g = jax.nn.sigmoid(gates[:, 1 * H:2 * H])
        g_g = jnp.tanh(gates[:, 2 * H:3 * H])
        o_g = jax.nn.sigmoid(gates[:, 3 * H:4 * H])
        c = f_g * c + i_g * g_g
        h = o_g * jnp.tanh(c)
    return jnp.dot(h, w_cls, precision=hp) + b_cls


if __name__ == "__main__":
    root = jax.random.PRNGKey(0)
    kp, kx = jax.random.split(root)
    params = make_params(kp)
    x = jax.random.normal(kx, (B, T, I), jnp.float32)

    out = lstm_model(x, params)
    out = jax.block_until_ready(out)
    assert out.shape == (B, O)

    ref = reference(x, params)
    # Precision contract: bf16 MXU operands (x, h, weights) with f32
    # accumulation; gate math is exact f32 -> tighter tolerance than before.
    assert bool(jnp.allclose(out, ref, rtol=1e-2, atol=1e-2)), "mismatch vs reference"

    print("KERNEL_OK")
</pallas_src>

<mosaic_0001>
module attributes {stable_mosaic.version = 11 : i64} {
  func.func @lstm_kernel(%arg0: i32, %arg1: memref<64x32xbf16, #tpu.memory_space<vmem>>, %arg2: memref<160x512xbf16, #tpu.memory_space<vmem>>, %arg3: memref<1x512xf32, #tpu.memory_space<vmem>>, %arg4: memref<128x8xbf16, #tpu.memory_space<vmem>>, %arg5: memref<1x8xf32, #tpu.memory_space<vmem>>, %arg6: memref<8x8xf32, #tpu.memory_space<vmem>>, %arg7: memref<64x512xf32, #tpu.memory_space<vmem>>) attributes {dimension_semantics = [#tpu.dimension_semantics<arbitrary>], iteration_bounds = array<i64: 1>, scalar_prefetch = 0 : i64, scratch_operands = 1 : i64, tpu.core_type = #tpu.core_type<tc>, window_params = [{pipeline_mode = #tpu.pipeline_mode<synchronous>, transform_indices = @transform_0, window_bounds = array<i64: 64, 32>}, {pipeline_mode = #tpu.pipeline_mode<synchronous>, transform_indices = @transform_1, window_bounds = array<i64: 160, 512>}, {pipeline_mode = #tpu.pipeline_mode<synchronous>, transform_indices = @transform_2, window_bounds = array<i64: 1, 512>}, {pipeline_mode = #tpu.pipeline_mode<synchronous>, transform_indices = @transform_3, window_bounds = array<i64: 128, 8>}, {pipeline_mode = #tpu.pipeline_mode<synchronous>, transform_indices = @transform_4, window_bounds = array<i64: 1, 8>}, {pipeline_mode = #tpu.pipeline_mode<synchronous>, transform_indices = @transform_5, window_bounds = array<i64: 8, 8>}]} {
    %c0 = arith.constant 0 : index
    %c0_0 = arith.constant 0 : index
    %0 = vector.load %arg1[%c0, %c0_0] : memref<64x32xbf16, #tpu.memory_space<vmem>>, vector<64x32xbf16>
    %c0_1 = arith.constant 0 : index
    %c0_2 = arith.constant 0 : index
    %1 = vector.load %arg2[%c0_1, %c0_2] : memref<160x512xbf16, #tpu.memory_space<vmem>>, vector<32x512xbf16>
    %cst = arith.constant dense<0.000000e+00> : vector<64x512xf32>
    %2 = tpu.matmul %0, %1, %cst {dimension_numbers = #tpu.dot_dimension_numbers<[1], [0], [0], [1], [0, 0, 1, 1], [], []>} : vector<64x32xbf16>, vector<32x512xbf16>, vector<64x512xf32> -> vector<64x512xf32>
    %c0_3 = arith.constant 0 : index
    %c0_4 = arith.constant 0 : index
    %3 = vector.load %arg3[%c0_3, %c0_4] : memref<1x512xf32, #tpu.memory_space<vmem>>, vector<1x512xf32>
    %4 = vector.broadcast %3 : vector<1x512xf32> to vector<64x512xf32>
    %5 = arith.addf %2, %4 : vector<64x512xf32>
    %c0_5 = arith.constant 0 : index
    %c0_6 = arith.constant 0 : index
    %6 = vector.load %arg7[%c0_5, %c0_6] : memref<64x512xf32, #tpu.memory_space<vmem>>, vector<64x512xf32>
    tpu.vector_store %arg7[%c0_5, %c0_6], %5 {strides = array<i32>} : memref<64x512xf32, #tpu.memory_space<vmem>>, vector<64x512xf32>,
    %c32 = arith.constant 32 : index
    %c0_7 = arith.constant 0 : index
    %7 = vector.load %arg2[%c32, %c0_7] : memref<160x512xbf16, #tpu.memory_space<vmem>>, vector<128x512xbf16>
    %cst_8 = arith.constant 0.000000e+00 : f32
    %8 = vector.broadcast %cst_8 : f32 to vector<8x128xf32>
    %cst_9 = arith.constant 0.000000e+00 : f32
    %9 = vector.broadcast %cst_9 : f32 to vector<8x128xf32>
    %c0_10 = arith.constant 0 : index
    %c0_11 = arith.constant 0 : index
    %10 = vector.load %arg7[%c0_10, %c0_11] : memref<64x512xf32, #tpu.memory_space<vmem>>, vector<8x512xf32>
    %11 = arith.truncf %8 : vector<8x128xf32> to vector<8x128xbf16>
    %cst_12 = arith.constant dense<0.000000e+00> : vector<8x512xf32>
    %12 = tpu.matmul %11, %7, %cst_12 {dimension_numbers = #tpu.dot_dimension_numbers<[1], [0], [0], [1], [0, 0, 1, 1], [], []>} : vector<8x128xbf16>, vector<128x512xbf16>, vector<8x512xf32> -> vector<8x512xf32>
    %13 = arith.addf %10, %12 : vector<8x512xf32>
    %14 = vector.extract_strided_slice %13 {offsets = [0, 0], sizes = [8, 128], strides = [1, 1]} : vector<8x512xf32> to vector<8x128xf32>
    %cst_13 = arith.constant 5.000000e-01 : f32
    %15 = vector.broadcast %cst_13 : f32 to vector<8x128xf32>
    %16 = arith.mulf %15, %14 : vector<8x128xf32>
    %17 = math.tanh %16 : vector<8x128xf32>
    %cst_14 = arith.constant 5.000000e-01 : f32
    %18 = vector.broadcast %cst_14 : f32 to vector<8x128xf32>
    %19 = arith.mulf %18, %17 : vector<8x128xf32>
    %cst_15 = arith.constant 5.000000e-01 : f32
    %20 = vector.broadcast %cst_15 : f32 to vector<8x128xf32>
    %21 = arith.addf %19, %20 : vector<8x128xf32>
    %22 = vector.extract_strided_slice %13 {offsets = [0, 128], sizes = [8, 128], strides = [1, 1]} : vector<8x512xf32> to vector<8x128xf32>
    %cst_16 = arith.constant 5.000000e-01 : f32
    %23 = vector.broadcast %cst_16 : f32 to vector<8x128xf32>
    %24 = arith.mulf %23, %22 : vector<8x128xf32>
    %25 = math.tanh %24 : vector<8x128xf32>
    %cst_17 = arith.constant 5.000000e-01 : f32
    %26 = vector.broadcast %cst_17 : f32 to vector<8x128xf32>
    %27 = arith.mulf %26, %25 : vector<8x128xf32>
    %cst_18 = arith.constant 5.000000e-01 : f32
    %28 = vector.broadcast %cst_18 : f32 to vector<8x128xf32>
    %29 = arith.addf %27, %28 : vector<8x128xf32>
    %30 = vector.extract_strided_slice %13 {offsets = [0, 256], sizes = [8, 128], strides = [1, 1]} : vector<8x512xf32> to vector<8x128xf32>
    %31 = math.tanh %30 : vector<8x128xf32>
    %32 = vector.extract_strided_slice %13 {offsets = [0, 384], sizes = [8, 128], strides = [1, 1]} : vector<8x512xf32> to vector<8x128xf32>
    %cst_19 = arith.constant 5.000000e-01 : f32
    %33 = vector.broadcast %cst_19 : f32 to vector<8x128xf32>
    %34 = arith.mulf %33, %32 : vector<8x128xf32>
    %35 = math.tanh %34 : vector<8x128xf32>
    %cst_20 = arith.constant 5.000000e-01 : f32
    %36 = vector.broadcast %cst_20 : f32 to vector<8x128xf32>
    %37 = arith.mulf %36, %35 : vector<8x128xf32>
    %cst_21 = arith.constant 5.000000e-01 : f32
    %38 = vector.broadcast %cst_21 : f32 to vector<8x128xf32>
    %39 = arith.addf %37, %38 : vector<8x128xf32>
    %40 = arith.mulf %29, %9 : vector<8x128xf32>
    %41 = arith.mulf %21, %31 : vector<8x128xf32>
    %42 = arith.addf %40, %41 : vector<8x128xf32>
    %43 = math.tanh %42 : vector<8x128xf32>
    %44 = arith.mulf %39, %43 : vector<8x128xf32>
    %c8 = arith.constant 8 : index
    %c0_22 = arith.constant 0 : index
    %45 = vector.load %arg7[%c8, %c0_22] : memref<64x512xf32, #tpu.memory_space<vmem>>, vector<8x512xf32>
    %46 = arith.truncf %44 : vector<8x128xf32> to vector<8x128xbf16>
    %cst_23 = arith.constant dense<0.000000e+00> : vector<8x512xf32>
    %47 = tpu.matmul %46, %7, %cst_23 {dimension_numbers = #tpu.dot_dimension_numbers<[1], [0], [0], [1], [0, 0, 1, 1], [], []>} : vector<8x128xbf16>, vector<128x512xbf16>, vector<8x512xf32> -> vector<8x512xf32>
    %48 = arith.addf %45, %47 : vector<8x512xf32>
    %49 = vector.extract_strided_slice %48 {offsets = [0, 0], sizes = [8, 128], strides = [1, 1]} : vector<8x512xf32> to vector<8x128xf32>
    %cst_24 = arith.constant 5.000000e-01 : f32
    %50 = vector.broadcast %cst_24 : f32 to vector<8x128xf32>
    %51 = arith.mulf %50, %49 : vector<8x128xf32>
    %52 = math.tanh %51 : vector<8x128xf32>
    %cst_25 = arith.constant 5.000000e-01 : f32
    %53 = vector.broadcast %cst_25 : f32 to vector<8x128xf32>
    %54 = arith.mulf %53, %52 : vector<8x128xf32>
    %cst_26 = arith.constant 5.000000e-01 : f32
    %55 = vector.broadcast %cst_26 : f32 to vector<8x128xf32>
    %56 = arith.addf %54, %55 : vector<8x128xf32>
    %57 = vector.extract_strided_slice %48 {offsets = [0, 128], sizes = [8, 128], strides = [1, 1]} : vector<8x512xf32> to vector<8x128xf32>
    %cst_27 = arith.constant 5.000000e-01 : f32
    %58 = vector.broadcast %cst_27 : f32 to vector<8x128xf32>
    %59 = arith.mulf %58, %57 : vector<8x128xf32>
    %60 = math.tanh %59 : vector<8x128xf32>
    %cst_28 = arith.constant 5.000000e-01 : f32
    %61 = vector.broadcast %cst_28 : f32 to vector<8x128xf32>
    %62 = arith.mulf %61, %60 : vector<8x128xf32>
    %cst_29 = arith.constant 5.000000e-01 : f32
    %63 = vector.broadcast %cst_29 : f32 to vector<8x128xf32>
    %64 = arith.addf %62, %63 : vector<8x128xf32>
    %65 = vector.extract_strided_slice %48 {offsets = [0, 256], sizes = [8, 128], strides = [1, 1]} : vector<8x512xf32> to vector<8x128xf32>
    %66 = math.tanh %65 : vector<8x128xf32>
    %67 = vector.extract_strided_slice %48 {offsets = [0, 384], sizes = [8, 128], strides = [1, 1]} : vector<8x512xf32> to vector<8x128xf32>
    %cst_30 = arith.constant 5.000000e-01 : f32
    %68 = vector.broadcast %cst_30 : f32 to vector<8x128xf32>
    %69 = arith.mulf %68, %67 : vector<8x128xf32>
    %70 = math.tanh %69 : vector<8x128xf32>
    %cst_31 = arith.constant 5.000000e-01 : f32
    %71 = vector.broadcast %cst_31 : f32 to vector<8x128xf32>
    %72 = arith.mulf %71, %70 : vector<8x128xf32>
    %cst_32 = arith.constant 5.000000e-01 : f32
    %73 = vector.broadcast %cst_32 : f32 to vector<8x128xf32>
    %74 = arith.addf %72, %73 : vector<8x128xf32>
    %75 = arith.mulf %64, %42 : vector<8x128xf32>
    %76 = arith.mulf %56, %66 : vector<8x128xf32>
    %77 = arith.addf %75, %76 : vector<8x128xf32>
    %78 = math.tanh %77 : vector<8x128xf32>
    %79 = arith.mulf %74, %78 : vector<8x128xf32>
    %c16 = arith.constant 16 : index
    %c0_33 = arith.constant 0 : index
    %80 = vector.load %arg7[%c16, %c0_33] : memref<64x512xf32, #tpu.memory_space<vmem>>, vector<8x512xf32>
    %81 = arith.truncf %79 : vector<8x128xf32> to vector<8x128xbf16>
    %cst_34 = arith.constant dense<0.000000e+00> : vector<8x512xf32>
    %82 = tpu.matmul %81, %7, %cst_34 {dimension_numbers = #tpu.dot_dimension_numbers<[1], [0], [0], [1], [0, 0, 1, 1], [], []>} : vector<8x128xbf16>, vector<128x512xbf16>, vector<8x512xf32> -> vector<8x512xf32>
    %83 = arith.addf %80, %82 : vector<8x512xf32>
    %84 = vector.extract_strided_slice %83 {offsets = [0, 0], sizes = [8, 128], strides = [1, 1]} : vector<8x512xf32> to vector<8x128xf32>
    %cst_35 = arith.constant 5.000000e-01 : f32
    %85 = vector.broadcast %cst_35 : f32 to vector<8x128xf32>
    %86 = arith.mulf %85, %84 : vector<8x128xf32>
    %87 = math.tanh %86 : vector<8x128xf32>
    %cst_36 = arith.constant 5.000000e-01 : f32
    %88 = vector.broadcast %cst_36 : f32 to vector<8x128xf32>
    %89 = arith.mulf %88, %87 : vector<8x128xf32>
    %cst_37 = arith.constant 5.000000e-01 : f32
    %90 = vector.broadcast %cst_37 : f32 to vector<8x128xf32>
    %91 = arith.addf %89, %90 : vector<8x128xf32>
    %92 = vector.extract_strided_slice %83 {offsets = [0, 128], sizes = [8, 128], strides = [1, 1]} : vector<8x512xf32> to vector<8x128xf32>
    %cst_38 = arith.constant 5.000000e-01 : f32
    %93 = vector.broadcast %cst_38 : f32 to vector<8x128xf32>
    %94 = arith.mulf %93, %92 : vector<8x128xf32>
    %95 = math.tanh %94 : vector<8x128xf32>
    %cst_39 = arith.constant 5.000000e-01 : f32
    %96 = vector.broadcast %cst_39 : f32 to vector<8x128xf32>
    %97 = arith.mulf %96, %95 : vector<8x128xf32>
    %cst_40 = arith.constant 5.000000e-01 : f32
    %98 = vector.broadcast %cst_40 : f32 to vector<8x128xf32>
    %99 = arith.addf %97, %98 : vector<8x128xf32>
    %100 = vector.extract_strided_slice %83 {offsets = [0, 256], sizes = [8, 128], strides = [1, 1]} : vector<8x512xf32> to vector<8x128xf32>
    %101 = math.tanh %100 : vector<8x128xf32>
    %102 = vector.extract_strided_slice %83 {offsets = [0, 384], sizes = [8, 128], strides = [1, 1]} : vector<8x512xf32> to vector<8x128xf32>
    %cst_41 = arith.constant 5.000000e-01 : f32
    %103 = vector.broadcast %cst_41 : f32 to vector<8x128xf32>
    %104 = arith.mulf %103, %102 : vector<8x128xf32>
    %105 = math.tanh %104 : vector<8x128xf32>
    %cst_42 = arith.constant 5.000000e-01 : f32
    %106 = vector.broadcast %cst_42 : f32 to vector<8x128xf32>
    %107 = arith.mulf %106, %105 : vector<8x128xf32>
    %cst_43 = arith.constant 5.000000e-01 : f32
    %108 = vector.broadcast %cst_43 : f32 to vector<8x128xf32>
    %109 = arith.addf %107, %108 : vector<8x128xf32>
    %110 = arith.mulf %99, %77 : vector<8x128xf32>
    %111 = arith.mulf %91, %101 : vector<8x128xf32>
    %112 = arith.addf %110, %111 : vector<8x128xf32>
    %113 = math.tanh %112 : vector<8x128xf32>
    %114 = arith.mulf %109, %113 : vector<8x128xf32>
    %c24 = arith.constant 24 : index
    %c0_44 = arith.constant 0 : index
    %115 = vector.load %arg7[%c24, %c0_44] : memref<64x512xf32, #tpu.memory_space<vmem>>, vector<8x512xf32>
    %116 = arith.truncf %114 : vector<8x128xf32> to vector<8x128xbf16>
    %cst_45 = arith.constant dense<0.000000e+00> : vector<8x512xf32>
    %117 = tpu.matmul %116, %7, %cst_45 {dimension_numbers = #tpu.dot_dimension_numbers<[1], [0], [0], [1], [0, 0, 1, 1], [], []>} : vector<8x128xbf16>, vector<128x512xbf16>, vector<8x512xf32> -> vector<8x512xf32>
    %118 = arith.addf %115, %117 : vector<8x512xf32>
    %119 = vector.extract_strided_slice %118 {offsets = [0, 0], sizes = [8, 128], strides = [1, 1]} : vector<8x512xf32> to vector<8x128xf32>
    %cst_46 = arith.constant 5.000000e-01 : f32
    %120 = vector.broadcast %cst_46 : f32 to vector<8x128xf32>
    %121 = arith.mulf %120, %119 : vector<8x128xf32>
    %122 = math.tanh %121 : vector<8x128xf32>
    %cst_47 = arith.constant 5.000000e-01 : f32
    %123 = vector.broadcast %cst_47 : f32 to vector<8x128xf32>
    %124 = arith.mulf %123, %122 : vector<8x128xf32>
    %cst_48 = arith.constant 5.000000e-01 : f32
    %125 = vector.broadcast %cst_48 : f32 to vector<8x128xf32>
    %126 = arith.addf %124, %125 : vector<8x128xf32>
    %127 = vector.extract_strided_slice %118 {offsets = [0, 128], sizes = [8, 128], strides = [1, 1]} : vector<8x512xf32> to vector<8x128xf32>
    %cst_49 = arith.constant 5.000000e-01 : f32
    %128 = vector.broadcast %cst_49 : f32 to vector<8x128xf32>
    %129 = arith.mulf %128, %127 : vector<8x128xf32>
    %130 = math.tanh %129 : vector<8x128xf32>
    %cst_50 = arith.constant 5.000000e-01 : f32
    %131 = vector.broadcast %cst_50 : f32 to vector<8x128xf32>
    %132 = arith.mulf %131, %130 : vector<8x128xf32>
    %cst_51 = arith.constant 5.000000e-01 : f32
    %133 = vector.broadcast %cst_51 : f32 to vector<8x128xf32>
    %134 = arith.addf %132, %133 : vector<8x128xf32>
    %135 = vector.extract_strided_slice %118 {offsets = [0, 256], sizes = [8, 128], strides = [1, 1]} : vector<8x512xf32> to vector<8x128xf32>
    %136 = math.tanh %135 : vector<8x128xf32>
    %137 = vector.extract_strided_slice %118 {offsets = [0, 384], sizes = [8, 128], strides = [1, 1]} : vector<8x512xf32> to vector<8x128xf32>
    %cst_52 = arith.constant 5.000000e-01 : f32
    %138 = vector.broadcast %cst_52 : f32 to vector<8x128xf32>
    %139 = arith.mulf %138, %137 : vector<8x128xf32>
    %140 = math.tanh %139 : vector<8x128xf32>
    %cst_53 = arith.constant 5.000000e-01 : f32
    %141 = vector.broadcast %cst_53 : f32 to vector<8x128xf32>
    %142 = arith.mulf %141, %140 : vector<8x128xf32>
    %cst_54 = arith.constant 5.000000e-01 : f32
    %143 = vector.broadcast %cst_54 : f32 to vector<8x128xf32>
    %144 = arith.addf %142, %143 : vector<8x128xf32>
    %145 = arith.mulf %134, %112 : vector<8x128xf32>
    %146 = arith.mulf %126, %136 : vector<8x128xf32>
    %147 = arith.addf %145, %146 : vector<8x128xf32>
    %148 = math.tanh %147 : vector<8x128xf32>
    %149 = arith.mulf %144, %148 : vector<8x128xf32>
    %c32_55 = arith.constant 32 : index
    %c0_56 = arith.constant 0 : index
    %150 = vector.load %arg7[%c32_55, %c0_56] : memref<64x512xf32, #tpu.memory_space<vmem>>, vector<8x512xf32>
    %151 = arith.truncf %149 : vector<8x128xf32> to vector<8x128xbf16>
    %cst_57 = arith.constant dense<0.000000e+00> : vector<8x512xf32>
    %152 = tpu.matmul %151, %7, %cst_57 {dimension_numbers = #tpu.dot_dimension_numbers<[1], [0], [0], [1], [0, 0, 1, 1], [], []>} : vector<8x128xbf16>, vector<128x512xbf16>, vector<8x512xf32> -> vector<8x512xf32>
    %153 = arith.addf %150, %152 : vector<8x512xf32>
    %154 = vector.extract_strided_slice %153 {offsets = [0, 0], sizes = [8, 128], strides = [1, 1]} : vector<8x512xf32> to vector<8x128xf32>
    %cst_58 = arith.constant 5.000000e-01 : f32
    %155 = vector.broadcast %cst_58 : f32 to vector<8x128xf32>
    %156 = arith.mulf %155, %154 : vector<8x128xf32>
    %157 = math.tanh %156 : vector<8x128xf32>
    %cst_59 = arith.constant 5.000000e-01 : f32
    %158 = vector.broadcast %cst_59 : f32 to vector<8x128xf32>
    %159 = arith.mulf %158, %157 : vector<8x128xf32>
    %cst_60 = arith.constant 5.000000e-01 : f32
    %160 = vector.broadcast %cst_60 : f32 to vector<8x128xf32>
    %161 = arith.addf %159, %160 : vector<8x128xf32>
    %162 = vector.extract_strided_slice %153 {offsets = [0, 128], sizes = [8, 128], strides = [1, 1]} : vector<8x512xf32> to vector<8x128xf32>
    %cst_61 = arith.constant 5.000000e-01 : f32
    %163 = vector.broadcast %cst_61 : f32 to vector<8x128xf32>
    %164 = arith.mulf %163, %162 : vector<8x128xf32>
    %165 = math.tanh %164 : vector<8x128xf32>
    %cst_62 = arith.constant 5.000000e-01 : f32
    %166 = vector.broadcast %cst_62 : f32 to vector<8x128xf32>
    %167 = arith.mulf %166, %165 : vector<8x128xf32>
    %cst_63 = arith.constant 5.000000e-01 : f32
    %168 = vector.broadcast %cst_63 : f32 to vector<8x128xf32>
    %169 = arith.addf %167, %168 : vector<8x128xf32>
    %170 = vector.extract_strided_slice %153 {offsets = [0, 256], sizes = [8, 128], strides = [1, 1]} : vector<8x512xf32> to vector<8x128xf32>
    %171 = math.tanh %170 : vector<8x128xf32>
    %172 = vector.extract_strided_slice %153 {offsets = [0, 384], sizes = [8, 128], strides = [1, 1]} : vector<8x512xf32> to vector<8x128xf32>
    %cst_64 = arith.constant 5.000000e-01 : f32
    %173 = vector.broadcast %cst_64 : f32 to vector<8x128xf32>
    %174 = arith.mulf %173, %172 : vector<8x128xf32>
    %175 = math.tanh %174 : vector<8x128xf32>
    %cst_65 = arith.constant 5.000000e-01 : f32
    %176 = vector.broadcast %cst_65 : f32 to vector<8x128xf32>
    %177 = arith.mulf %176, %175 : vector<8x128xf32>
    %cst_66 = arith.constant 5.000000e-01 : f32
    %178 = vector.broadcast %cst_66 : f32 to vector<8x128xf32>
    %179 = arith.addf %177, %178 : vector<8x128xf32>
    %180 = arith.mulf %169, %147 : vector<8x128xf32>
    %181 = arith.mulf %161, %171 : vector<8x128xf32>
    %182 = arith.addf %180, %181 : vector<8x128xf32>
    %183 = math.tanh %182 : vector<8x128xf32>
    %184 = arith.mulf %179, %183 : vector<8x128xf32>
    %c40 = arith.constant 40 : index
    %c0_67 = arith.constant 0 : index
    %185 = vector.load %arg7[%c40, %c0_67] : memref<64x512xf32, #tpu.memory_space<vmem>>, vector<8x512xf32>
    %186 = arith.truncf %184 : vector<8x128xf32> to vector<8x128xbf16>
    %cst_68 = arith.constant dense<0.000000e+00> : vector<8x512xf32>
    %187 = tpu.matmul %186, %7, %cst_68 {dimension_numbers = #tpu.dot_dimension_numbers<[1], [0], [0], [1], [0, 0, 1, 1], [], []>} : vector<8x128xbf16>, vector<128x512xbf16>, vector<8x512xf32> -> vector<8x512xf32>
    %188 = arith.addf %185, %187 : vector<8x512xf32>
    %189 = vector.extract_strided_slice %188 {offsets = [0, 0], sizes = [8, 128], strides = [1, 1]} : vector<8x512xf32> to vector<8x128xf32>
    %cst_69 = arith.constant 5.000000e-01 : f32
    %190 = vector.broadcast %cst_69 : f32 to vector<8x128xf32>
    %191 = arith.mulf %190, %189 : vector<8x128xf32>
    %192 = math.tanh %191 : vector<8x128xf32>
    %cst_70 = arith.constant 5.000000e-01 : f32
    %193 = vector.broadcast %cst_70 : f32 to vector<8x128xf32>
    %194 = arith.mulf %193, %192 : vector<8x128xf32>
    %cst_71 = arith.constant 5.000000e-01 : f32
    %195 = vector.broadcast %cst_71 : f32 to vector<8x128xf32>
    %196 = arith.addf %194, %195 : vector<8x128xf32>
    %197 = vector.extract_strided_slice %188 {offsets = [0, 128], sizes = [8, 128], strides = [1, 1]} : vector<8x512xf32> to vector<8x128xf32>
    %cst_72 = arith.constant 5.000000e-01 : f32
    %198 = vector.broadcast %cst_72 : f32 to vector<8x128xf32>
    %199 = arith.mulf %198, %197 : vector<8x128xf32>
    %200 = math.tanh %199 : vector<8x128xf32>
    %cst_73 = arith.constant 5.000000e-01 : f32
    %201 = vector.broadcast %cst_73 : f32 to vector<8x128xf32>
    %202 = arith.mulf %201, %200 : vector<8x128xf32>
    %cst_74 = arith.constant 5.000000e-01 : f32
    %203 = vector.broadcast %cst_74 : f32 to vector<8x128xf32>
    %204 = arith.addf %202, %203 : vector<8x128xf32>
    %205 = vector.extract_strided_slice %188 {offsets = [0, 256], sizes = [8, 128], strides = [1, 1]} : vector<8x512xf32> to vector<8x128xf32>
    %206 = math.tanh %205 : vector<8x128xf32>
    %207 = vector.extract_strided_slice %188 {offsets = [0, 384], sizes = [8, 128], strides = [1, 1]} : vector<8x512xf32> to vector<8x128xf32>
    %cst_75 = arith.constant 5.000000e-01 : f32
    %208 = vector.broadcast %cst_75 : f32 to vector<8x128xf32>
    %209 = arith.mulf %208, %207 : vector<8x128xf32>
    %210 = math.tanh %209 : vector<8x128xf32>
    %cst_76 = arith.constant 5.000000e-01 : f32
    %211 = vector.broadcast %cst_76 : f32 to vector<8x128xf32>
    %212 = arith.mulf %211, %210 : vector<8x128xf32>
    %cst_77 = arith.constant 5.000000e-01 : f32
    %213 = vector.broadcast %cst_77 : f32 to vector<8x128xf32>
    %214 = arith.addf %212, %213 : vector<8x128xf32>
    %215 = arith.mulf %204, %182 : vector<8x128xf32>
    %216 = arith.mulf %196, %206 : vector<8x128xf32>
    %217 = arith.addf %215, %216 : vector<8x128xf32>
    %218 = math.tanh %217 : vector<8x128xf32>
    %219 = arith.mulf %214, %218 : vector<8x128xf32>
    %c48 = arith.constant 48 : index
    %c0_78 = arith.constant 0 : index
    %220 = vector.load %arg7[%c48, %c0_78] : memref<64x512xf32, #tpu.memory_space<vmem>>, vector<8x512xf32>
    %221 = arith.truncf %219 : vector<8x128xf32> to vector<8x128xbf16>
    %cst_79 = arith.constant dense<0.000000e+00> : vector<8x512xf32>
    %222 = tpu.matmul %221, %7, %cst_79 {dimension_numbers = #tpu.dot_dimension_numbers<[1], [0], [0], [1], [0, 0, 1, 1], [], []>} : vector<8x128xbf16>, vector<128x512xbf16>, vector<8x512xf32> -> vector<8x512xf32>
    %223 = arith.addf %220, %222 : vector<8x512xf32>
    %224 = vector.extract_strided_slice %223 {offsets = [0, 0], sizes = [8, 128], strides = [1, 1]} : vector<8x512xf32> to vector<8x128xf32>
    %cst_80 = arith.constant 5.000000e-01 : f32
    %225 = vector.broadcast %cst_80 : f32 to vector<8x128xf32>
    %226 = arith.mulf %225, %224 : vector<8x128xf32>
    %227 = math.tanh %226 : vector<8x128xf32>
    %cst_81 = arith.constant 5.000000e-01 : f32
    %228 = vector.broadcast %cst_81 : f32 to vector<8x128xf32>
    %229 = arith.mulf %228, %227 : vector<8x128xf32>
    %cst_82 = arith.constant 5.000000e-01 : f32
    %230 = vector.broadcast %cst_82 : f32 to vector<8x128xf32>
    %231 = arith.addf %229, %230 : vector<8x128xf32>
    %232 = vector.extract_strided_slice %223 {offsets = [0, 128], sizes = [8, 128], strides = [1, 1]} : vector<8x512xf32> to vector<8x128xf32>
    %cst_83 = arith.constant 5.000000e-01 : f32
    %233 = vector.broadcast %cst_83 : f32 to vector<8x128xf32>
    %234 = arith.mulf %233, %232 : vector<8x128xf32>
    %235 = math.tanh %234 : vector<8x128xf32>
    %cst_84 = arith.constant 5.000000e-01 : f32
    %236 = vector.broadcast %cst_84 : f32 to vector<8x128xf32>
    %237 = arith.mulf %236, %235 : vector<8x128xf32>
    %cst_85 = arith.constant 5.000000e-01 : f32
    %238 = vector.broadcast %cst_85 : f32 to vector<8x128xf32>
    %239 = arith.addf %237, %238 : vector<8x128xf32>
    %240 = vector.extract_strided_slice %223 {offsets = [0, 256], sizes = [8, 128], strides = [1, 1]} : vector<8x512xf32> to vector<8x128xf32>
    %241 = math.tanh %240 : vector<8x128xf32>
    %242 = vector.extract_strided_slice %223 {offsets = [0, 384], sizes = [8, 128], strides = [1, 1]} : vector<8x512xf32> to vector<8x128xf32>
    %cst_86 = arith.constant 5.000000e-01 : f32
    %243 = vector.broadcast %cst_86 : f32 to vector<8x128xf32>
    %244 = arith.mulf %243, %242 : vector<8x128xf32>
    %245 = math.tanh %244 : vector<8x128xf32>
    %cst_87 = arith.constant 5.000000e-01 : f32
    %246 = vector.broadcast %cst_87 : f32 to vector<8x128xf32>
    %247 = arith.mulf %246, %245 : vector<8x128xf32>
    %cst_88 = arith.constant 5.000000e-01 : f32
    %248 = vector.broadcast %cst_88 : f32 to vector<8x128xf32>
    %249 = arith.addf %247, %248 : vector<8x128xf32>
    %250 = arith.mulf %239, %217 : vector<8x128xf32>
    %251 = arith.mulf %231, %241 : vector<8x128xf32>
    %252 = arith.addf %250, %251 : vector<8x128xf32>
    %253 = math.tanh %252 : vector<8x128xf32>
    %254 = arith.mulf %249, %253 : vector<8x128xf32>
    %c56 = arith.constant 56 : index
    %c0_89 = arith.constant 0 : index
    %255 = vector.load %arg7[%c56, %c0_89] : memref<64x512xf32, #tpu.memory_space<vmem>>, vector<8x512xf32>
    %256 = arith.truncf %254 : vector<8x128xf32> to vector<8x128xbf16>
    %cst_90 = arith.constant dense<0.000000e+00> : vector<8x512xf32>
    %257 = tpu.matmul %256, %7, %cst_90 {dimension_numbers = #tpu.dot_dimension_numbers<[1], [0], [0], [1], [0, 0, 1, 1], [], []>} : vector<8x128xbf16>, vector<128x512xbf16>, vector<8x512xf32> -> vector<8x512xf32>
    %258 = arith.addf %255, %257 : vector<8x512xf32>
    %259 = vector.extract_strided_slice %258 {offsets = [0, 0], sizes = [8, 128], strides = [1, 1]} : vector<8x512xf32> to vector<8x128xf32>
    %cst_91 = arith.constant 5.000000e-01 : f32
    %260 = vector.broadcast %cst_91 : f32 to vector<8x128xf32>
    %261 = arith.mulf %260, %259 : vector<8x128xf32>
    %262 = math.tanh %261 : vector<8x128xf32>
    %cst_92 = arith.constant 5.000000e-01 : f32
    %263 = vector.broadcast %cst_92 : f32 to vector<8x128xf32>
    %264 = arith.mulf %263, %262 : vector<8x128xf32>
    %cst_93 = arith.constant 5.000000e-01 : f32
    %265 = vector.broadcast %cst_93 : f32 to vector<8x128xf32>
    %266 = arith.addf %264, %265 : vector<8x128xf32>
    %267 = vector.extract_strided_slice %258 {offsets = [0, 128], sizes = [8, 128], strides = [1, 1]} : vector<8x512xf32> to vector<8x128xf32>
    %cst_94 = arith.constant 5.000000e-01 : f32
    %268 = vector.broadcast %cst_94 : f32 to vector<8x128xf32>
    %269 = arith.mulf %268, %267 : vector<8x128xf32>
    %270 = math.tanh %269 : vector<8x128xf32>
    %cst_95 = arith.constant 5.000000e-01 : f32
    %271 = vector.broadcast %cst_95 : f32 to vector<8x128xf32>
    %272 = arith.mulf %271, %270 : vector<8x128xf32>
    %cst_96 = arith.constant 5.000000e-01 : f32
    %273 = vector.broadcast %cst_96 : f32 to vector<8x128xf32>
    %274 = arith.addf %272, %273 : vector<8x128xf32>
    %275 = vector.extract_strided_slice %258 {offsets = [0, 256], sizes = [8, 128], strides = [1, 1]} : vector<8x512xf32> to vector<8x128xf32>
    %276 = math.tanh %275 : vector<8x128xf32>
    %277 = vector.extract_strided_slice %258 {offsets = [0, 384], sizes = [8, 128], strides = [1, 1]} : vector<8x512xf32> to vector<8x128xf32>
    %cst_97 = arith.constant 5.000000e-01 : f32
    %278 = vector.broadcast %cst_97 : f32 to vector<8x128xf32>
    %279 = arith.mulf %278, %277 : vector<8x128xf32>
    %280 = math.tanh %279 : vector<8x128xf32>
    %cst_98 = arith.constant 5.000000e-01 : f32
    %281 = vector.broadcast %cst_98 : f32 to vector<8x128xf32>
    %282 = arith.mulf %281, %280 : vector<8x128xf32>
    %cst_99 = arith.constant 5.000000e-01 : f32
    %283 = vector.broadcast %cst_99 : f32 to vector<8x128xf32>
    %284 = arith.addf %282, %283 : vector<8x128xf32>
    %285 = arith.mulf %274, %252 : vector<8x128xf32>
    %286 = arith.mulf %266, %276 : vector<8x128xf32>
    %287 = arith.addf %285, %286 : vector<8x128xf32>
    %288 = math.tanh %287 : vector<8x128xf32>
    %289 = arith.mulf %284, %288 : vector<8x128xf32>
    %290 = arith.truncf %289 : vector<8x128xf32> to vector<8x128xbf16>
    %c0_100 = arith.constant 0 : index
    %c0_101 = arith.constant 0 : index
    %291 = vector.load %arg4[%c0_100, %c0_101] : memref<128x8xbf16, #tpu.memory_space<vmem>>, vector<128x8xbf16>
    %cst_102 = arith.constant dense<0.000000e+00> : vector<8x8xf32>
    %292 = tpu.matmul %290, %291, %cst_102 {dimension_numbers = #tpu.dot_dimension_numbers<[1], [0], [0], [1], [0, 0, 1, 1], [], []>} : vector<8x128xbf16>, vector<128x8xbf16>, vector<8x8xf32> -> vector<8x8xf32>
    %c0_103 = arith.constant 0 : index
    %c0_104 = arith.constant 0 : index
    %293 = vector.load %arg5[%c0_103, %c0_104] : memref<1x8xf32, #tpu.memory_space<vmem>>, vector<1x8xf32>
    %294 = vector.broadcast %293 : vector<1x8xf32> to vector<8x8xf32>
    %295 = arith.addf %292, %294 : vector<8x8xf32>
    %c0_105 = arith.constant 0 : index
    %c0_106 = arith.constant 0 : index
    %296 = vector.load %arg6[%c0_105, %c0_106] : memref<8x8xf32, #tpu.memory_space<vmem>>, vector<8x8xf32>
    tpu.vector_store %arg6[%c0_105, %c0_106], %295 {strides = array<i32>} : memref<8x8xf32, #tpu.memory_space<vmem>>, vector<8x8xf32>,
    return
  }
  func.func @transform_0(%arg0: i32) -> (i32, i32) {
    %c0_i32 = arith.constant 0 : i32
    %c0_i32_0 = arith.constant 0 : i32
    %c0_i32_1 = arith.constant 0 : i32
    return %c0_i32, %c0_i32_0 : i32, i32
  }
  func.func @transform_1(%arg0: i32) -> (i32, i32) {
    %c0_i32 = arith.constant 0 : i32
    %c0_i32_0 = arith.constant 0 : i32
    %c0_i32_1 = arith.constant 0 : i32
    return %c0_i32, %c0_i32_0 : i32, i32
  }
  func.func @transform_2(%arg0: i32) -> (i32, i32) {
    %c0_i32 = arith.constant 0 : i32
    %c0_i32_0 = arith.constant 0 : i32
    %c0_i32_1 = arith.constant 0 : i32
    return %c0_i32, %c0_i32_0 : i32, i32
  }
  func.func @transform_3(%arg0: i32) -> (i32, i32) {
    %c0_i32 = arith.constant 0 : i32
    %c0_i32_0 = arith.constant 0 : i32
    %c0_i32_1 = arith.constant 0 : i32
    return %c0_i32, %c0_i32_0 : i32, i32
  }
  func.func @transform_4(%arg0: i32) -> (i32, i32) {
    %c0_i32 = arith.constant 0 : i32
    %c0_i32_0 = arith.constant 0 : i32
    %c0_i32_1 = arith.constant 0 : i32
    return %c0_i32, %c0_i32_0 : i32, i32
  }
  func.func @transform_5(%arg0: i32) -> (i32, i32) {
    %c0_i32 = arith.constant 0 : i32
    %c0_i32_0 = arith.constant 0 : i32
    %c0_i32_1 = arith.constant 0 : i32
    return %c0_i32, %c0_i32_0 : i32, i32
  }
}

</mosaic_0001>

<bundles_post_ra>
// kernel: tpu_custom_call.1
= control target key start
LH: loop header
LB: loop body
LE: loop exit
PB: predicated region body
PF: predicated region fallthrough
CT: control target
= control target key end

     0   :  { %10 = vsyncpa [#allocation4], 0  ;;  %s2465_s0 = inlined_call_operand.vmem [shape: bf16[64,32], index: 0, kind: input, shape index: {}]   ;;  %s2466_s1 = inlined_call_operand.hbm [shape: bf16[160,512], index: 1, kind: input, shape index: {}]   ;;  %s2467_s2 = inlined_call_operand.vmem [shape: f32[1,512], index: 2, kind: input, shape index: {}]   ;;  %s2468_s3 = inlined_call_operand.vmem [shape: bf16[128,8], index: 3, kind: input, shape index: {}]   ;;  %s2469_s4 = inlined_call_operand.vmem [shape: f32[1,8], index: 4, kind: input, shape index: {}]   ;;  %s2470_s5 = inlined_call_operand.hbm [shape: f32[8,8], index: 5, kind: output, shape index: {}]  }
   0x1   :  { %11 = vsyncpa [#allocation5], 0  ;;  %s1842_s18 = smov [#allocation3]  }
   0x2   :  { %s19_s19 = sshll.u32 %s1842_s18, 4  ;;  %s20_s19 = int_to_ptr.vmem [resolvable:$true] %s19_s19 }
   0x3   :  { %s1806_s20 = scalar_lea.vmem %s20_s19, 5120  ;;  %p1811_p1 = scmp.lt.s32.totalorder %s20_s19, %s20_s19 }
   0x4   :  { %p1807_p0 = scmp.ne.s32.totalorder %s20_s19, %s1806_s20  ;;  %p1812_p2 = scmp.lt.s32.totalorder %s1806_s20, %s1806_s20 }
   0x6   :  { %p1813_p3 = por %p1812_p2, %p1811_p1 }
   0x8   :  { %p1814_p4 = pnand %p1813_p3, %p1807_p0 }
   0xa   :  { %1817 = shalt.err (!%p1814_p4)
}
   0xb   :  { %s1843_s21 = smov 256   ;;  %s1844_s22 = smov 16  }
   0xc   :  { %25 = dma.hbm_to_vmem [thread:$0]  %s2466_s1, 5120, %s20_s19, [#allocation4], %s1843_s21, %s1843_s21, %s1844_s22  }
   0xd   :  { %1838 = dma.done.wait [#allocation4], 5120  }
   0xe   :  { %1839 = vsyncadd [#allocation4], 4294962176  ;;  %v2471_v0 = vmov 0   ;;  %v1614_v1 = vld [vmem:[#allocation3 + $0x24] ss:$16 sps:$4 sm:$0xff]   ;;  %vm134_vm0 = vcmask 261120   ;;  %v54_v45 = vlaneseq }
   0xf   :  { %179 = vmatprep.mubr.bf16.mxu0 %v2471_v0  ;;  %252 = vmatprep.mubr.bf16.mxu1 %v2471_v0  ;;  %v1616_v2 = vld [vmem:[#allocation3 + $0x2c] ss:$16 sps:$4 sm:$0xff]   ;;  %v1618_v3 = vld [vmem:[#allocation3 + $0x20] ss:$16 sps:$4 sm:$0xff]   ;;  %v1619_v4 = vld [vmem:[#allocation3 + $0x28] ss:$16 sps:$4 sm:$0xff]  }
  0x10   :  { %159 = vmatprep.subr.bf16.mxu0 %v1614_v1  ;;  %232 = vmatprep.subr.bf16.mxu1 %v1616_v2  ;;  %v1620_v5 = vld [vmem:[#allocation3 + $0x4] ss:$16 sps:$4 sm:$0xff]   ;;  %v1622_v6 = vld [vmem:[#allocation3 + $0xc] ss:$16 sps:$4 sm:$0xff]   ;;  %v1624_v7 = vld [vmem:[#allocation3] ss:$16 sps:$4 sm:$0xff]  }
  0x11   :  { %160 = vmatpush1.bf16.msra.mxu0 %v1618_v3  ;;  %233 = vmatpush1.bf16.msra.mxu1 %v1619_v4  ;;  %v1625_v8 = vld [vmem:[#allocation3 + $0x8] ss:$16 sps:$4 sm:$0xff]   ;;  %v1626_v9 = vld [vmem:[%s2465_s0] sm:$0xff]   ;;  %v1889_v11 = vld [vmem:[#allocation3 + $0x12c] ss:$16 sps:$4 sm:$0xff]   ;;  %v55_v46 = vshrl.u32 %v54_v45, 7 }
  0x12   :  { %161 = vmatprep.subr.bf16.mxu0 %v1620_v5  ;;  %234 = vmatprep.subr.bf16.mxu1 %v1622_v6  ;;  %v1887_v10 = vld [vmem:[#allocation3 + $0x124] ss:$16 sps:$4 sm:$0xff]   ;;  %v1891_v12 = vld [vmem:[#allocation3 + $0x120] ss:$16 sps:$4 sm:$0xff]   ;;  %v1893_v13 = vld [vmem:[#allocation3 + $0x128] ss:$16 sps:$4 sm:$0xff]  }
  0x13   :  { %v1896_v14 = vld [vmem:[#allocation3 + $0x104] ss:$16 sps:$4 sm:$0xff]   ;;  %v1899_v15 = vld [vmem:[#allocation3 + $0x10c] ss:$16 sps:$4 sm:$0xff]   ;;  %v1903_v16 = vld [vmem:[#allocation3 + $0x100] ss:$16 sps:$4 sm:$0xff]  }
  0x14   :  { %v1907_v17 = vld [vmem:[#allocation3 + $0x108] ss:$16 sps:$4 sm:$0xff]   ;;  %v1911_v18 = vld [vmem:[#allocation3 + $0xe4] ss:$16 sps:$4 sm:$0xff]   ;;  %v1918_v20 = vld [vmem:[#allocation3 + $0xec] ss:$16 sps:$4 sm:$0xff]  }
  0x15   :  { %162 = vmatpush1.bf16.msra.mxu0 %v1624_v7  ;;  %235 = vmatpush1.bf16.msra.mxu1 %v1625_v8  ;;  %v1639_v19 = vld [vmem:[%s2465_s0 + $0x8] sm:$0xff]   ;;  %v1920_v21 = vld [vmem:[#allocation3 + $0xe0] ss:$16 sps:$4 sm:$0xff]   ;;  %v1928_v23 = vld [vmem:[#allocation3 + $0xc4] ss:$16 sps:$4 sm:$0xff]   ;;  %v64_v47 = vsub.s32 2, %v55_v46 }
  0x16   :  { %521 = vmatprep.subr.bf16.mxu0 %v1887_v10  ;;  %562 = vmatprep.subr.bf16.mxu1 %v1889_v11  ;;  %v1924_v22 = vld [vmem:[#allocation3 + $0xe8] ss:$16 sps:$4 sm:$0xff]   ;;  %v1930_v24 = vld [vmem:[#allocation3 + $0xcc] ss:$16 sps:$4 sm:$0xff]   ;;  %v1934_v25 = vld [vmem:[#allocation3 + $0xc0] ss:$16 sps:$4 sm:$0xff]  }
  0x17   :  { %v1938_v26 = vld [vmem:[#allocation3 + $0xc8] ss:$16 sps:$4 sm:$0xff]   ;;  %v1942_v27 = vld [vmem:[#allocation3 + $0xa4] ss:$16 sps:$4 sm:$0xff]   ;;  %v1944_v28 = vld [vmem:[#allocation3 + $0xac] ss:$16 sps:$4 sm:$0xff]  }
  0x18   :  { %1529 = vmatmul.mubr.msk.bf16.vlgmr.msra.gmra.mxu0 %vm134_vm0, %v1626_v9  ;;  %1533 = vmatmul.mubr.msk.bf16.vlgmr.msra.gmra.mxu1 %vm134_vm0, %v1626_v9  ;;  %v1652_v29 = vld [vmem:[%s2465_s0 + $0x10] sm:$0xff]   ;;  %v1953_v31 = vld [vmem:[#allocation3 + $0xa8] ss:$16 sps:$4 sm:$0xff]   ;;  %v1961_v33 = vld [vmem:[#allocation3 + $0x8c] ss:$16 sps:$4 sm:$0xff]   ;;  %v56_v48 = vsub.s32 0, %v55_v46 }
  0x19   :  { %522 = vmatpush1.bf16.msra.mxu0 %v1891_v12  ;;  %563 = vmatpush1.bf16.msra.mxu1 %v1893_v13  ;;  %v1951_v30 = vld [vmem:[#allocation3 + $0xa0] ss:$16 sps:$4 sm:$0xff]   ;;  %v1957_v32 = vld [vmem:[#allocation3 + $0x84] ss:$16 sps:$4 sm:$0xff]   ;;  %v1967_v35 = vld [vmem:[#allocation3 + $0x88] ss:$16 sps:$4 sm:$0xff]  }
  0x1a   :  { %523 = vmatprep.subr.bf16.mxu0 %v1896_v14  ;;  %564 = vmatprep.subr.bf16.mxu1 %v1899_v15  ;;  %v1965_v34 = vld [vmem:[#allocation3 + $0x80] ss:$16 sps:$4 sm:$0xff]   ;;  %v1971_v36 = vld [vmem:[#allocation3 + $0x64] ss:$16 sps:$4 sm:$0xff]   ;;  %v1975_v37 = vld [vmem:[#allocation3 + $0x6c] ss:$16 sps:$4 sm:$0xff]  }
  0x1b   :  { %189 = vmatprep.mubr.bf16.mxu0 %v2471_v0  ;;  %262 = vmatprep.mubr.bf16.mxu1 %v2471_v0  ;;  %v1665_v38 = vld [vmem:[%s2465_s0 + $0x18] sm:$0xff]   ;;  %v1982_v39 = vld [vmem:[#allocation3 + $0x60] ss:$16 sps:$4 sm:$0xff]   ;;  %v1986_v41 = vld [vmem:[#allocation3 + $0x44] ss:$16 sps:$4 sm:$0xff]   ;;  %v68_v49 = vsub.s32 3, %v55_v46 }
  0x1c   :  { %v1984_v40 = vld [vmem:[#allocation3 + $0x68] ss:$16 sps:$4 sm:$0xff]   ;;  %v1988_v42 = vld [vmem:[#allocation3 + $0x4c] ss:$16 sps:$4 sm:$0xff]   ;;  %v1998_v43 = vld [vmem:[#allocation3 + $0x40] ss:$16 sps:$4 sm:$0xff]  }
  0x1d   :  { %524 = vmatpush1.bf16.msra.mxu0 %v1903_v16  ;;  %565 = vmatpush1.bf16.msra.mxu1 %v1907_v17  ;;  %v2000_v44 = vld [vmem:[#allocation3 + $0x48] ss:$16 sps:$4 sm:$0xff]   ;;  %v52_v50 = vld [vmem:[%s2467_s2] sm:$0xf]  ;;  %v60_v54 = vsub.s32 1, %v55_v46  ;;  %vm1847_vm1 = vmmov 0  }
  0x1e   :  { %525 = vmatprep.subr.bf16.mxu0 %v1911_v18  ;;  %566 = vmatprep.subr.bf16.mxu1 %v1918_v20  ;;  %v2053_v53 = vrot.slane %v52_v50, %v64_v47  ;;  %v57_v57 = vrot.slane %v52_v50, %v56_v48  ;;  %v2059_v58 = vrot.slane %v52_v50, %v68_v49  ;;  %s1848_s24 = smov [#allocation6]   ;;  %vm1500_vm2 = vcmask 64512  }
  0x1f   :  { %v61_v61 = vrot.slane %v52_v50, %v60_v54  ;;  %s1508_s1 = sshll.u32 %s1848_s24, 4  ;;  %s1509_s1 = int_to_ptr.vmem [resolvable:$true] %s1508_s1 }
  0x20   :  { %1530 = vmatmul.mubr.msk.bf16.gmra.mxu0 %vm134_vm0, %v1639_v19  ;;  %1534 = vmatmul.mubr.msk.bf16.gmra.mxu1 %vm134_vm0, %v1639_v19  ;;  %s1818_s25 = scalar_lea.vmem %s1509_s1, 128  ;;  %p1823_p6 = scmp.lt.s32.totalorder %s1509_s1, %s1509_s1 }
  0x21   :  { %526 = vmatpush1.bf16.msra.mxu0 %v1920_v21  ;;  %567 = vmatpush1.bf16.msra.mxu1 %v1924_v22  ;;  %p1819_p5 = scmp.ne.s32.totalorder %s1509_s1, %s1818_s25  ;;  %p1824_p7 = scmp.lt.s32.totalorder %s1818_s25, %s1818_s25 }
  0x22   :  { %527 = vmatprep.subr.bf16.mxu0 %v1928_v23  ;;  %568 = vmatprep.subr.bf16.mxu1 %v1930_v24 }
  0x23   :  { %199 = vmatprep.mubr.bf16.mxu0 %v2471_v0  ;;  %272 = vmatprep.mubr.bf16.mxu1 %v2471_v0  ;;  %p1825_p8 = por %p1824_p7, %p1823_p6 }
  0x25   :  { %528 = vmatpush1.bf16.msra.mxu0 %v1934_v25  ;;  %569 = vmatpush1.bf16.msra.mxu1 %v1938_v26  ;;  %p1826_p9 = pnand %p1825_p8, %p1819_p5 }
  0x26   :  { %529 = vmatprep.subr.bf16.mxu0 %v1942_v27  ;;  %570 = vmatprep.subr.bf16.mxu1 %v1944_v28 }
  0x28   :  { %1531 = vmatmul.mubr.msk.bf16.gmra.mxu0 %vm134_vm0, %v1652_v29  ;;  %1535 = vmatmul.mubr.msk.bf16.gmra.mxu1 %vm134_vm0, %v1652_v29 }
  0x29   :  { %530 = vmatpush1.bf16.msra.mxu0 %v1951_v30  ;;  %571 = vmatpush1.bf16.msra.mxu1 %v1953_v31 }
  0x2a   :  { %531 = vmatprep.subr.bf16.mxu0 %v1957_v32  ;;  %572 = vmatprep.subr.bf16.mxu1 %v1961_v33 }
  0x2b   :  { %209 = vmatprep.mubr.bf16.mxu0 %v2471_v0  ;;  %282 = vmatprep.mubr.bf16.mxu1 %v2471_v0 }
  0x2d   :  { %532 = vmatpush1.bf16.msra.mxu0 %v1965_v34  ;;  %573 = vmatpush1.bf16.msra.mxu1 %v1967_v35 }
  0x2e   :  { %533 = vmatprep.subr.bf16.mxu0 %v1971_v36  ;;  %574 = vmatprep.subr.bf16.mxu1 %v1975_v37 }
  0x30   :  { %1532 = vmatmul.mubr.msk.bf16.gmra.mxu0 %vm134_vm0, %v1665_v38  ;;  %1536 = vmatmul.mubr.msk.bf16.gmra.mxu1 %vm134_vm0, %v1665_v38 }
  0x31   :  { %534 = vmatpush1.bf16.msra.mxu0 %v1982_v39  ;;  %575 = vmatpush1.bf16.msra.mxu1 %v1984_v40 }
  0x32   :  { %535 = vmatprep.subr.bf16.mxu0 %v1986_v41  ;;  %576 = vmatprep.subr.bf16.mxu1 %v1988_v42 }
  0x33   :  { %553 = vmatprep.mubr.bf16.mxu0 %v2471_v0  ;;  %594 = vmatprep.mubr.bf16.mxu1 %v2471_v0 }
  0x35   :  { %536 = vmatpush1.bf16.msra.mxu0 %v1998_v43  ;;  %577 = vmatpush1.bf16.msra.mxu1 %v2000_v44 }
  0x36   :  { %630 = vmatprep.subr.bf16.mxu0 %v1887_v10  ;;  %671 = vmatprep.subr.bf16.mxu1 %v1889_v11 }
  0x38   :  { %554 = vmatmul.mubr.bf16.vlgmr.msra.gmra.mxu0 %v2471_v0  ;;  %595 = vmatmul.mubr.bf16.vlgmr.msra.gmra.mxu1 %v2471_v0 }
  0x39   :  { %631 = vmatpush1.bf16.msra.mxu0 %v1891_v12  ;;  %672 = vmatpush1.bf16.msra.mxu1 %v1893_v13 }
  0x3a   :  { %632 = vmatprep.subr.bf16.mxu0 %v1896_v14  ;;  %673 = vmatprep.subr.bf16.mxu1 %v1899_v15 }
  0x3b   :  { %662 = vmatprep.mubr.bf16.mxu0 %v2471_v0  ;;  %703 = vmatprep.mubr.bf16.mxu1 %v2471_v0 }
  0x3d   :  { %633 = vmatpush1.bf16.msra.mxu0 %v1903_v16  ;;  %674 = vmatpush1.bf16.msra.mxu1 %v1907_v17 }
  0x3e   :  { %634 = vmatprep.subr.bf16.mxu0 %v1911_v18  ;;  %675 = vmatprep.subr.bf16.mxu1 %v1918_v20 }
  0x41   :  { %635 = vmatpush1.bf16.msra.mxu0 %v1920_v21  ;;  %676 = vmatpush1.bf16.msra.mxu1 %v1924_v22 }
  0x42   :  { %636 = vmatprep.subr.bf16.mxu0 %v1928_v23  ;;  %677 = vmatprep.subr.bf16.mxu1 %v1930_v24 }
  0x45   :  { %637 = vmatpush1.bf16.msra.mxu0 %v1934_v25  ;;  %678 = vmatpush1.bf16.msra.mxu1 %v1938_v26 }
  0x46   :  { %638 = vmatprep.subr.bf16.mxu0 %v1942_v27  ;;  %679 = vmatprep.subr.bf16.mxu1 %v1944_v28 }
  0x49   :  { %639 = vmatpush1.bf16.msra.mxu0 %v1951_v30  ;;  %680 = vmatpush1.bf16.msra.mxu1 %v1953_v31 }
  0x4a   :  { %640 = vmatprep.subr.bf16.mxu0 %v1957_v32  ;;  %681 = vmatprep.subr.bf16.mxu1 %v1961_v33 }
  0x4d   :  { %641 = vmatpush1.bf16.msra.mxu0 %v1965_v34  ;;  %682 = vmatpush1.bf16.msra.mxu1 %v1967_v35 }
  0x4e   :  { %642 = vmatprep.subr.bf16.mxu0 %v1971_v36  ;;  %683 = vmatprep.subr.bf16.mxu1 %v1975_v37 }
  0x51   :  { %643 = vmatpush1.bf16.msra.mxu0 %v1982_v39  ;;  %684 = vmatpush1.bf16.msra.mxu1 %v1984_v40 }
  0x52   :  { %644 = vmatprep.subr.bf16.mxu0 %v1986_v41  ;;  %685 = vmatprep.subr.bf16.mxu1 %v1988_v42 }
  0x55   :  { %645 = vmatpush1.bf16.msra.mxu0 %v1998_v43  ;;  %686 = vmatpush1.bf16.msra.mxu1 %v2000_v44 }
  0x56   :  { %739 = vmatprep.subr.bf16.mxu0 %v1887_v10  ;;  %780 = vmatprep.subr.bf16.mxu1 %v1889_v11 }
  0xd8   :  { %v2049_v51 = vpop.f32.mrf.mxu0  ;;  %v2051_v52 = vpop.f32.mrf.mxu1 }
  0xda   :  { %v2055_v55 = vpop.f32.mrf.mxu0  ;;  %v2057_v56 = vpop.f32.mrf.mxu1 }
  0xdc   :  { %v185_v59 = vpop.f32.mrf.mxu0  ;;  %v258_v60 = vpop.f32.mrf.mxu1 }
  0xdd   :  { %v2061_v62 = vadd.f32 %v185_v59, %v57_v57  ;;  %v2064_v63 = vadd.f32 %v258_v60, %v2053_v53 }
  0xde   :  { %v187_v1 = vpop.f32.mrf.mxu0  ;;  %v260_v2 = vpop.f32.mrf.mxu1 }
  0xdf   :  { %v2066_v3 = vadd.f32 %v187_v1, %v61_v61  ;;  %v2069_v4 = vadd.f32 %v260_v2, %v2059_v58 }
  0xe0   :  { %v191_v5 = vpop.f32.mrf.mxu0  ;;  %v264_v6 = vpop.f32.mrf.mxu1 }
  0xe1   :  { %v2071_v7 = vadd.f32 %v191_v5, %v57_v57  ;;  %v2074_v8 = vadd.f32 %v264_v6, %v2053_v53 }
  0xe2   :  { %v193_v9 = vpop.f32.mrf.mxu0  ;;  %v266_v19 = vpop.f32.mrf.mxu1 }
  0xe3   :  { %v2076_v29 = vadd.f32 %v193_v9, %v61_v61  ;;  %v2079_v38 = vadd.f32 %v266_v19, %v2059_v58 }
  0xe4   :  { %v195_v45 = vpop.f32.mrf.mxu0  ;;  %v268_v46 = vpop.f32.mrf.mxu1 }
  0xe5   :  { %v2081_v47 = vadd.f32 %v195_v45, %v57_v57  ;;  %v2084_v48 = vadd.f32 %v268_v46, %v2053_v53 }
  0xe6   :  { %v197_v49 = vpop.f32.mrf.mxu0  ;;  %v270_v50 = vpop.f32.mrf.mxu1 }
  0xe7   :  { %2473 = vst [vmem:[#allocation9_spill] sm:$0xff] %v2081_v47  ;;  %2474 = vst [vmem:[#allocation10_spill] sm:$0xff] %v2084_v48  ;;  %v2086_v54 = vadd.f32 %v197_v49, %v61_v61  ;;  %v2089_v59 = vadd.f32 %v270_v50, %v2059_v58  ;;  %v255_v47 = vadd.f32 %v2051_v52, %v2053_v53 }
  0xe8   :  { %v201_v60 = vpop.f32.mrf.mxu0  ;;  %v274_v1 = vpop.f32.mrf.mxu1 }
  0xe9   :  { %2475 = vst [vmem:[#allocation11_spill] sm:$0xff] %v2086_v54  ;;  %2476 = vst [vmem:[#allocation12_spill] sm:$0xff] %v2089_v59  ;;  %v2091_v2 = vadd.f32 %v201_v60, %v57_v57  ;;  %v2094_v5 = vadd.f32 %v274_v1, %v2053_v53 }
  0xea   :  { %v203_v6 = vpop.f32.mrf.mxu0  ;;  %v276_v9 = vpop.f32.mrf.mxu1 }
  0xeb   :  { %2477 = vst [vmem:[#allocation13_spill] sm:$0xff] %v2091_v2  ;;  %2478 = vst [vmem:[#allocation14_spill] sm:$0xff] %v2094_v5  ;;  %v2096_v19 = vadd.f32 %v203_v6, %v61_v61  ;;  %v2099_v45 = vadd.f32 %v276_v9, %v2059_v58 }
  0xec   :  { %v205_v46 = vpop.f32.mrf.mxu0  ;;  %v278_v49 = vpop.f32.mrf.mxu1 }
  0xed   :  { %2479 = vst [vmem:[#allocation15_spill] sm:$0xff] %v2096_v19  ;;  %2480 = vst [vmem:[#allocation16_spill] sm:$0xff] %v2099_v45  ;;  %v2101_v0 = vadd.f32 %v205_v46, %v57_v57  ;;  %v2104_v50 = vadd.f32 %v278_v49, %v2053_v53 }
  0xee   :  { %v207_v59 = vpop.f32.mrf.mxu0  ;;  %v280_v60 = vpop.f32.mrf.mxu1 }
  0xef   :  { %2481 = vst [vmem:[#allocation17_spill] sm:$0xff] %v2101_v0  ;;  %2482 = vst [vmem:[#allocation18_spill] sm:$0xff] %v2104_v50  ;;  %v2106_v2 = vadd.f32 %v207_v59, %v61_v61  ;;  %v2109_v1 = vadd.f32 %v280_v60, %v2059_v58 }
  0xf0   :  { %v211_v5 = vpop.f32.mrf.mxu0  ;;  %v284_v6 = vpop.f32.mrf.mxu1 }
  0xf1   :  { %2483 = vst [vmem:[#allocation19_spill] sm:$0xff] %v2106_v2  ;;  %2484 = vst [vmem:[#allocation20_spill] sm:$0xff] %v2109_v1  ;;  %v2111_v19 = vadd.f32 %v211_v5, %v57_v57  ;;  %v2114_v9 = vadd.f32 %v284_v6, %v2053_v53 }
  0xf2   :  { %v213_v45 = vpop.f32.mrf.mxu0  ;;  %v286_v46 = vpop.f32.mrf.mxu1 }
  0xf3   :  { %2485 = vst [vmem:[#allocation21_spill] sm:$0xff] %v2111_v19  ;;  %2486 = vst [vmem:[#allocation22_spill] sm:$0xff] %v2114_v9  ;;  %v2116_v0 = vadd.f32 %v213_v45, %v61_v61  ;;  %v2119_v49 = vadd.f32 %v286_v46, %v2059_v58  ;;  %v182_v19 = vadd.f32 %v2049_v51, %v57_v57 }
  0xf4   :  { %v215_v50 = vpop.f32.mrf.mxu0  ;;  %v288_v59 = vpop.f32.mrf.mxu1  ;;  %v184_v46 = vadd.f32 %v2055_v55, %v61_v61 }
  0xf5   :  { %2487 = vst [vmem:[#allocation23_spill] sm:$0xff] %v2116_v0  ;;  %2488 = vst [vmem:[#allocation24_spill] sm:$0xff] %v2119_v49  ;;  %v2121_v2 = vadd.f32 %v215_v50, %v57_v57  ;;  %v2124_v60 = vadd.f32 %v288_v59, %v2053_v53 }
  0xf6   :  { %v217_v1 = vpop.f32.mrf.mxu0  ;;  %v290_v5 = vpop.f32.mrf.mxu1 }
  0xf7   :  { %2489 = vst [vmem:[#allocation25_spill] sm:$0xff] %v2121_v2  ;;  %2490 = vst [vmem:[#allocation26_spill] sm:$0xff] %v2124_v60  ;;  %v2127_v6 = vadd.f32 %v217_v1, %v61_v61  ;;  %v2130_v9 = vadd.f32 %v290_v5, %v2059_v58 }
  0xf8   :  { %v555_v45 = vpop.f32.mrf.mxu0  ;;  %v596_v0 = vpop.f32.mrf.mxu1 }
  0xf9   :  { %2491 = vst [vmem:[#allocation27_spill] sm:$0xff] %v2130_v9  ;;  %v603_v49 = vadd.f32 %v555_v45, %v182_v19  ;;  %v605_v5 = vadd.f32 %v596_v0, %v255_v47  ;;  %v257_v9 = vadd.f32 %v2057_v56, %v2059_v58 }
  0xfa   :  { %v557_v48 = vpop.f32.mrf.mxu0  ;;  %v598_v50 = vpop.f32.mrf.mxu1 }
  0xfb   :  { %v607_v2 = vmul.f32 0.5, %v603_v49  ;;  %v604_v54 = vadd.f32 %v557_v48, %v184_v46  ;;  %v606_v55 = vadd.f32 %v598_v50, %v257_v9 }
  0xfc   :  { %v559_v59 = vpop.f32.mrf.mxu0  ;;  %v600_v60 = vpop.f32.mrf.mxu1 }
  0xfd   :  { %1686 = vtanh.f32 %v607_v2  ;;  %v611_v51 = vmul.f32 0.5, %v604_v54  ;;  %v616_v61 = vmul.f32 0.5, %v606_v55  ;;  %v2492_v59 = vmov 0  }
  0xfe   :  { %v560_v57 = vpop.f32.mrf.mxu0  ;;  %v601_v1 = vpop.f32.mrf.mxu1 }
  0xff   :  { %1688 = vtanh.f32 %v611_v51 }
 0x100   :  { %1690 = vtanh.f32 %v605_v5 }
 0x101   :  { %1692 = vtanh.f32 %v616_v61 }
 0x10a   :  { %v1687_v19 = vpop.eup %1686 }
 0x10b   :  { %v609_v49 = vmul.f32 0.5, %v1687_v19 }
 0x10c   :  { %v1689_v48 = vpop.eup %1688 }
 0x10d   :  { %v610_v45 = vadd.f32 0.5, %v609_v49  ;;  %v613_v60 = vmul.f32 0.5, %v1689_v48  ;;  %v1691_v52 = vpop.eup %1690 }
 0x10e   :  { %v1693_v0 = vpop.eup %1692 }
 0x10f   :  { %v614_v46 = vadd.f32 0.5, %v613_v60  ;;  %v621_v54 = vmul.f32 %v1691_v52, %v610_v45  ;;  %v618_v47 = vmul.f32 0.5, %v1693_v0 }
 0x111   :  { %v620_v53 = vmul.f32 0.0, %v614_v46  ;;  %v619_v56 = vadd.f32 0.5, %v618_v47 }
 0x113   :  { %v2137_v2 = vadd.f32 %v621_v54, %v620_v53 }
 0x115   :  { %1694 = vtanh.f32 %v2137_v2 }
 0x122   :  { %v1695_v58 = vpop.eup %1694 }
 0x123   :  { %v624_v9 = vmul.f32 %v1695_v58, %v619_v56 }
 0x125   :  { %v629_v50 = vpack.c.bf16 %v624_v9, %v624_v9 }
 0x127   :  { %663 = vmatmul.mubr.bf16.vlgmr.msra.gmra.mxu0 %v629_v50  ;;  %704 = vmatmul.mubr.bf16.vlgmr.msra.gmra.mxu1 %v629_v50 }
 0x128   :  { %740 = vmatpush1.bf16.msra.mxu0 %v1891_v12  ;;  %781 = vmatpush1.bf16.msra.mxu1 %v1893_v13 }
 0x129   :  { %741 = vmatprep.subr.bf16.mxu0 %v1896_v14  ;;  %782 = vmatprep.subr.bf16.mxu1 %v1899_v15 }
 0x12a   :  { %771 = vmatprep.mubr.bf16.mxu0 %v2492_v59  ;;  %812 = vmatprep.mubr.bf16.mxu1 %v2492_v59 }
 0x12c   :  { %742 = vmatpush1.bf16.msra.mxu0 %v1903_v16  ;;  %783 = vmatpush1.bf16.msra.mxu1 %v1907_v17 }
 0x12d   :  { %743 = vmatprep.subr.bf16.mxu0 %v1911_v18  ;;  %784 = vmatprep.subr.bf16.mxu1 %v1918_v20 }
 0x130   :  { %744 = vmatpush1.bf16.msra.mxu0 %v1920_v21  ;;  %785 = vmatpush1.bf16.msra.mxu1 %v1924_v22 }
 0x131   :  { %745 = vmatprep.subr.bf16.mxu0 %v1928_v23  ;;  %786 = vmatprep.subr.bf16.mxu1 %v1930_v24 }
 0x134   :  { %746 = vmatpush1.bf16.msra.mxu0 %v1934_v25  ;;  %787 = vmatpush1.bf16.msra.mxu1 %v1938_v26 }
 0x135   :  { %747 = vmatprep.subr.bf16.mxu0 %v1942_v27  ;;  %788 = vmatprep.subr.bf16.mxu1 %v1944_v28 }
 0x138   :  { %748 = vmatpush1.bf16.msra.mxu0 %v1951_v30  ;;  %789 = vmatpush1.bf16.msra.mxu1 %v1953_v31 }
 0x139   :  { %749 = vmatprep.subr.bf16.mxu0 %v1957_v32  ;;  %790 = vmatprep.subr.bf16.mxu1 %v1961_v33 }
 0x13c   :  { %750 = vmatpush1.bf16.msra.mxu0 %v1965_v34  ;;  %791 = vmatpush1.bf16.msra.mxu1 %v1967_v35 }
 0x13d   :  { %751 = vmatprep.subr.bf16.mxu0 %v1971_v36  ;;  %792 = vmatprep.subr.bf16.mxu1 %v1975_v37 }
 0x140   :  { %752 = vmatpush1.bf16.msra.mxu0 %v1982_v39  ;;  %793 = vmatpush1.bf16.msra.mxu1 %v1984_v40 }
 0x141   :  { %753 = vmatprep.subr.bf16.mxu0 %v1986_v41  ;;  %794 = vmatprep.subr.bf16.mxu1 %v1988_v42 }
 0x144   :  { %754 = vmatpush1.bf16.msra.mxu0 %v1998_v43  ;;  %795 = vmatpush1.bf16.msra.mxu1 %v2000_v44 }
 0x145   :  { %848 = vmatprep.subr.bf16.mxu0 %v1887_v10  ;;  %889 = vmatprep.subr.bf16.mxu1 %v1889_v11 }
 0x1e7   :  { %v664_v51 = vpop.f32.mrf.mxu0  ;;  %v705_v57 = vpop.f32.mrf.mxu1 }
 0x1e8   :  { %v712_v1 = vadd.f32 %v664_v51, %v2061_v62  ;;  %v714_v45 = vadd.f32 %v705_v57, %v2064_v63 }
 0x1e9   :  { %v666_v5 = vpop.f32.mrf.mxu0  ;;  %v707_v55 = vpop.f32.mrf.mxu1 }
 0x1ea   :  { %v716_v61 = vmul.f32 0.5, %v712_v1  ;;  %v713_v19 = vadd.f32 %v666_v5, %v2066_v3  ;;  %v715_v53 = vadd.f32 %v707_v55, %v2069_v4 }
 0x1eb   :  { %v668_v49 = vpop.f32.mrf.mxu0  ;;  %v709_v48 = vpop.f32.mrf.mxu1 }
 0x1ec   :  { %1696 = vtanh.f32 %v716_v61  ;;  %v720_v60 = vmul.f32 0.5, %v713_v19  ;;  %v725_v54 = vmul.f32 0.5, %v715_v53 }
 0x1ed   :  { %v669_v46 = vpop.f32.mrf.mxu0  ;;  %v710_v52 = vpop.f32.mrf.mxu1 }
 0x1ee   :  { %1698 = vtanh.f32 %v720_v60 }
 0x1ef   :  { %1700 = vtanh.f32 %v714_v45 }
 0x1f0   :  { %1702 = vtanh.f32 %v725_v54 }
 0x1f9   :  { %v1697_v0 = vpop.eup %1696 }
 0x1fa   :  { %v718_v62 = vmul.f32 0.5, %v1697_v0 }
 0x1fb   :  { %v1699_v47 = vpop.eup %1698 }
 0x1fc   :  { %v719_v56 = vadd.f32 0.5, %v718_v62  ;;  %v722_v58 = vmul.f32 0.5, %v1699_v47  ;;  %v1701_v3 = vpop.eup %1700 }
 0x1fd   :  { %v1703_v57 = vpop.eup %1702 }
 0x1fe   :  { %v723_v9 = vadd.f32 0.5, %v722_v58  ;;  %v730_v50 = vmul.f32 %v1701_v3, %v719_v56  ;;  %v727_v1 = vmul.f32 0.5, %v1703_v57 }
 0x200   :  { %v729_v51 = vmul.f32 %v723_v9, %v2137_v2  ;;  %v728_v5 = vadd.f32 0.5, %v727_v1 }
 0x202   :  { %v2179_v63 = vadd.f32 %v730_v50, %v729_v51 }
 0x204   :  { %1704 = vtanh.f32 %v2179_v63 }
 0x211   :  { %v1705_v4 = vpop.eup %1704 }
 0x212   :  { %v733_v55 = vmul.f32 %v1705_v4, %v728_v5 }
 0x214   :  { %v738_v61 = vpack.c.bf16 %v733_v55, %v733_v55 }
 0x216   :  { %772 = vmatmul.mubr.bf16.vlgmr.msra.gmra.mxu0 %v738_v61  ;;  %813 = vmatmul.mubr.bf16.vlgmr.msra.gmra.mxu1 %v738_v61 }
 0x217   :  { %849 = vmatpush1.bf16.msra.mxu0 %v1891_v12  ;;  %890 = vmatpush1.bf16.msra.mxu1 %v1893_v13 }
 0x218   :  { %850 = vmatprep.subr.bf16.mxu0 %v1896_v14  ;;  %891 = vmatprep.subr.bf16.mxu1 %v1899_v15 }
 0x219   :  { %880 = vmatprep.mubr.bf16.mxu0 %v2492_v59  ;;  %921 = vmatprep.mubr.bf16.mxu1 %v2492_v59 }
 0x21b   :  { %851 = vmatpush1.bf16.msra.mxu0 %v1903_v16  ;;  %892 = vmatpush1.bf16.msra.mxu1 %v1907_v17 }
 0x21c   :  { %852 = vmatprep.subr.bf16.mxu0 %v1911_v18  ;;  %893 = vmatprep.subr.bf16.mxu1 %v1918_v20 }
 0x21f   :  { %853 = vmatpush1.bf16.msra.mxu0 %v1920_v21  ;;  %894 = vmatpush1.bf16.msra.mxu1 %v1924_v22 }
 0x220   :  { %854 = vmatprep.subr.bf16.mxu0 %v1928_v23  ;;  %895 = vmatprep.subr.bf16.mxu1 %v1930_v24 }
 0x223   :  { %855 = vmatpush1.bf16.msra.mxu0 %v1934_v25  ;;  %896 = vmatpush1.bf16.msra.mxu1 %v1938_v26 }
 0x224   :  { %856 = vmatprep.subr.bf16.mxu0 %v1942_v27  ;;  %897 = vmatprep.subr.bf16.mxu1 %v1944_v28 }
 0x227   :  { %857 = vmatpush1.bf16.msra.mxu0 %v1951_v30  ;;  %898 = vmatpush1.bf16.msra.mxu1 %v1953_v31 }
 0x228   :  { %858 = vmatprep.subr.bf16.mxu0 %v1957_v32  ;;  %899 = vmatprep.subr.bf16.mxu1 %v1961_v33 }
 0x22b   :  { %859 = vmatpush1.bf16.msra.mxu0 %v1965_v34  ;;  %900 = vmatpush1.bf16.msra.mxu1 %v1967_v35 }
 0x22c   :  { %860 = vmatprep.subr.bf16.mxu0 %v1971_v36  ;;  %901 = vmatprep.subr.bf16.mxu1 %v1975_v37 }
 0x22f   :  { %861 = vmatpush1.bf16.msra.mxu0 %v1982_v39  ;;  %902 = vmatpush1.bf16.msra.mxu1 %v1984_v40 }
 0x230   :  { %862 = vmatprep.subr.bf16.mxu0 %v1986_v41  ;;  %903 = vmatprep.subr.bf16.mxu1 %v1988_v42 }
 0x233   :  { %863 = vmatpush1.bf16.msra.mxu0 %v1998_v43  ;;  %904 = vmatpush1.bf16.msra.mxu1 %v2000_v44 }
 0x234   :  { %957 = vmatprep.subr.bf16.mxu0 %v1887_v10  ;;  %998 = vmatprep.subr.bf16.mxu1 %v1889_v11 }
 0x2d6   :  { %v773_v2 = vpop.f32.mrf.mxu0  ;;  %v814_v19 = vpop.f32.mrf.mxu1 }
 0x2d7   :  { %v821_v49 = vadd.f32 %v773_v2, %v2071_v7  ;;  %v823_v54 = vadd.f32 %v814_v19, %v2074_v8 }
 0x2d8   :  { %v775_v48 = vpop.f32.mrf.mxu0  ;;  %v816_v45 = vpop.f32.mrf.mxu1 }
 0x2d9   :  { %v825_v60 = vmul.f32 0.5, %v821_v49  ;;  %v822_v46 = vadd.f32 %v775_v48, %v2076_v29  ;;  %v824_v56 = vadd.f32 %v816_v45, %v2079_v38  ;;  %v2493_v48 = vld [vmem:[#allocation9_spill] sm:$0xff] }
 0x2da   :  { %v777_v52 = vpop.f32.mrf.mxu0  ;;  %v818_v53 = vpop.f32.mrf.mxu1 }
 0x2db   :  { %1706 = vtanh.f32 %v825_v60  ;;  %v829_v0 = vmul.f32 0.5, %v822_v46  ;;  %v834_v58 = vmul.f32 0.5, %v824_v56  ;;  %v2494_v53 = vld [vmem:[#allocation11_spill] sm:$0xff] }
 0x2dc   :  { %v778_v62 = vpop.f32.mrf.mxu0  ;;  %v819_v47 = vpop.f32.mrf.mxu1 }
 0x2dd   :  { %1708 = vtanh.f32 %v829_v0  ;;  %v2495_v47 = vld [vmem:[#allocation10_spill] sm:$0xff] }
 0x2de   :  { %1710 = vtanh.f32 %v823_v54 }
 0x2df   :  { %1712 = vtanh.f32 %v834_v58 }
 0x2e8   :  { %v1707_v3 = vpop.eup %1706 }
 0x2e9   :  { %v827_v7 = vmul.f32 0.5, %v1707_v3 }
 0x2ea   :  { %v1709_v9 = vpop.eup %1708 }
 0x2eb   :  { %v828_v50 = vadd.f32 0.5, %v827_v7  ;;  %v831_v51 = vmul.f32 0.5, %v1709_v9  ;;  %v1711_v29 = vpop.eup %1710 }
 0x2ec   :  { %v1713_v4 = vpop.eup %1712 }
 0x2ed   :  { %v832_v57 = vadd.f32 0.5, %v831_v51  ;;  %v839_v1 = vmul.f32 %v1711_v29, %v828_v50  ;;  %v836_v55 = vmul.f32 0.5, %v1713_v4 }
 0x2ef   :  { %v838_v5 = vmul.f32 %v832_v57, %v2179_v63  ;;  %v837_v61 = vadd.f32 0.5, %v836_v55 }
 0x2f1   :  { %v2221_v8 = vadd.f32 %v839_v1, %v838_v5 }
 0x2f3   :  { %1714 = vtanh.f32 %v2221_v8 }
 0x300   :  { %v1715_v38 = vpop.eup %1714 }
 0x301   :  { %v842_v2 = vmul.f32 %v1715_v38, %v837_v61 }
 0x303   :  { %v847_v19 = vpack.c.bf16 %v842_v2, %v842_v2 }
 0x305   :  { %881 = vmatmul.mubr.bf16.vlgmr.msra.gmra.mxu0 %v847_v19  ;;  %922 = vmatmul.mubr.bf16.vlgmr.msra.gmra.mxu1 %v847_v19 }
 0x306   :  { %958 = vmatpush1.bf16.msra.mxu0 %v1891_v12  ;;  %999 = vmatpush1.bf16.msra.mxu1 %v1893_v13 }
 0x307   :  { %959 = vmatprep.subr.bf16.mxu0 %v1896_v14  ;;  %1000 = vmatprep.subr.bf16.mxu1 %v1899_v15 }
 0x308   :  { %989 = vmatprep.mubr.bf16.mxu0 %v2492_v59  ;;  %1030 = vmatprep.mubr.bf16.mxu1 %v2492_v59 }
 0x30a   :  { %960 = vmatpush1.bf16.msra.mxu0 %v1903_v16  ;;  %1001 = vmatpush1.bf16.msra.mxu1 %v1907_v17 }
 0x30b   :  { %961 = vmatprep.subr.bf16.mxu0 %v1911_v18  ;;  %1002 = vmatprep.subr.bf16.mxu1 %v1918_v20 }
 0x30e   :  { %962 = vmatpush1.bf16.msra.mxu0 %v1920_v21  ;;  %1003 = vmatpush1.bf16.msra.mxu1 %v1924_v22 }
 0x30f   :  { %963 = vmatprep.subr.bf16.mxu0 %v1928_v23  ;;  %1004 = vmatprep.subr.bf16.mxu1 %v1930_v24 }
 0x312   :  { %964 = vmatpush1.bf16.msra.mxu0 %v1934_v25  ;;  %1005 = vmatpush1.bf16.msra.mxu1 %v1938_v26 }
 0x313   :  { %965 = vmatprep.subr.bf16.mxu0 %v1942_v27  ;;  %1006 = vmatprep.subr.bf16.mxu1 %v1944_v28 }
 0x316   :  { %966 = vmatpush1.bf16.msra.mxu0 %v1951_v30  ;;  %1007 = vmatpush1.bf16.msra.mxu1 %v1953_v31 }
 0x317   :  { %967 = vmatprep.subr.bf16.mxu0 %v1957_v32  ;;  %1008 = vmatprep.subr.bf16.mxu1 %v1961_v33 }
 0x31a   :  { %968 = vmatpush1.bf16.msra.mxu0 %v1965_v34  ;;  %1009 = vmatpush1.bf16.msra.mxu1 %v1967_v35 }
 0x31b   :  { %969 = vmatprep.subr.bf16.mxu0 %v1971_v36  ;;  %1010 = vmatprep.subr.bf16.mxu1 %v1975_v37 }
 0x31e   :  { %970 = vmatpush1.bf16.msra.mxu0 %v1982_v39  ;;  %1011 = vmatpush1.bf16.msra.mxu1 %v1984_v40 }
 0x31f   :  { %971 = vmatprep.subr.bf16.mxu0 %v1986_v41  ;;  %1012 = vmatprep.subr.bf16.mxu1 %v1988_v42 }
 0x322   :  { %972 = vmatpush1.bf16.msra.mxu0 %v1998_v43  ;;  %1013 = vmatpush1.bf16.msra.mxu1 %v2000_v44 }
 0x323   :  { %1066 = vmatprep.subr.bf16.mxu0 %v1887_v10  ;;  %1107 = vmatprep.subr.bf16.mxu1 %v1889_v11  ;;  %v2496_v10 = vld [vmem:[#allocation12_spill] sm:$0xff] }
 0x3c5   :  { %v882_v63 = vpop.f32.mrf.mxu0  ;;  %v923_v49 = vpop.f32.mrf.mxu1 }
 0x3c6   :  { %v930_v45 = vadd.f32 %v882_v63, %v2493_v48  ;;  %v932_v56 = vadd.f32 %v923_v49, %v2495_v47 }
 0x3c7   :  { %v884_v60 = vpop.f32.mrf.mxu0  ;;  %v925_v46 = vpop.f32.mrf.mxu1 }
 0x3c8   :  { %v934_v52 = vmul.f32 0.5, %v930_v45  ;;  %v931_v54 = vadd.f32 %v884_v60, %v2494_v53  ;;  %v933_v11 = vadd.f32 %v925_v46, %v2496_v10 }
 0x3c9   :  { %v886_v0 = vpop.f32.mrf.mxu0  ;;  %v927_v62 = vpop.f32.mrf.mxu1 }
 0x3ca   :  { %1716 = vtanh.f32 %v934_v52  ;;  %v938_v58 = vmul.f32 0.5, %v931_v54  ;;  %v943_v9 = vmul.f32 0.5, %v933_v11 }
 0x3cb   :  { %v887_v3 = vpop.f32.mrf.mxu0  ;;  %v928_v7 = vpop.f32.mrf.mxu1 }
 0x3cc   :  { %1718 = vtanh.f32 %v938_v58 }
 0x3cd   :  { %1720 = vtanh.f32 %v932_v56 }
 0x3ce   :  { %1722 = vtanh.f32 %v943_v9  ;;  %v2312_v9 = vld [vmem:[#allocation3 + $0x120] ss:$16 sps:$4 sm:$0xff]  }
 0x3d7   :  { %v1717_v50 = vpop.eup %1716 }
 0x3d8   :  { %v936_v51 = vmul.f32 0.5, %v1717_v50  ;;  %v2315_v50 = vld [vmem:[#allocation3 + $0x128] ss:$16 sps:$4 sm:$0xff]  }
 0x3d9   :  { %v1719_v29 = vpop.eup %1718 }
 0x3da   :  { %v937_v57 = vadd.f32 0.5, %v936_v51  ;;  %v940_v1 = vmul.f32 0.5, %v1719_v29  ;;  %v1721_v5 = vpop.eup %1720  ;;  %v2318_v51 = vld [vmem:[#allocation3 + $0x104] ss:$16 sps:$4 sm:$0xff]   ;;  %v2321_v29 = vld [vmem:[#allocation3 + $0x10c] ss:$16 sps:$4 sm:$0xff]  }
 0x3db   :  { %v1723_v2 = vpop.eup %1722 }
 0x3dc   :  { %v941_v4 = vadd.f32 0.5, %v940_v1  ;;  %v948_v55 = vmul.f32 %v1721_v5, %v937_v57  ;;  %v945_v19 = vmul.f32 0.5, %v1723_v2  ;;  %v2326_v57 = vld [vmem:[#allocation3 + $0x100] ss:$16 sps:$4 sm:$0xff]   ;;  %v2329_v1 = vld [vmem:[#allocation3 + $0x108] ss:$16 sps:$4 sm:$0xff]  }
 0x3dd   :  { %v2332_v5 = vld [vmem:[#allocation3 + $0xe4] ss:$16 sps:$4 sm:$0xff]   ;;  %v2347_v2 = vld [vmem:[#allocation3 + $0xcc] ss:$16 sps:$4 sm:$0xff]  }
 0x3de   :  { %v947_v61 = vmul.f32 %v941_v4, %v2221_v8  ;;  %v946_v63 = vadd.f32 0.5, %v945_v19  ;;  %v2335_v4 = vld [vmem:[#allocation3 + $0xec] ss:$16 sps:$4 sm:$0xff]   ;;  %v2350_v19 = vld [vmem:[#allocation3 + $0xc0] ss:$16 sps:$4 sm:$0xff]  }
 0x3e0   :  { %v2263_v38 = vadd.f32 %v948_v55, %v947_v61  ;;  %v2338_v55 = vld [vmem:[#allocation3 + $0xe0] ss:$16 sps:$4 sm:$0xff]   ;;  %v2341_v61 = vld [vmem:[#allocation3 + $0xe8] ss:$16 sps:$4 sm:$0xff]  }
 0x3e2   :  { %1724 = vtanh.f32 %v2263_v38 }
 0x3ef   :  { %v1725_v49 = vpop.eup %1724 }
 0x3f0   :  { %v951_v48 = vmul.f32 %v1725_v49, %v946_v63  ;;  %v2353_v63 = vld [vmem:[#allocation3 + $0xc8] ss:$16 sps:$4 sm:$0xff]   ;;  %v2356_v49 = vld [vmem:[#allocation3 + $0xa4] ss:$16 sps:$4 sm:$0xff]  }
 0x3f2   :  { %v956_v45 = vpack.c.bf16 %v951_v48, %v951_v48  ;;  %v2359_v48 = vld [vmem:[#allocation3 + $0xac] ss:$16 sps:$4 sm:$0xff]  }
 0x3f4   :  { %990 = vmatmul.mubr.bf16.vlgmr.msra.gmra.mxu0 %v956_v45  ;;  %1031 = vmatmul.mubr.bf16.vlgmr.msra.gmra.mxu1 %v956_v45  ;;  %v2362_v45 = vld [vmem:[#allocation3 + $0xa0] ss:$16 sps:$4 sm:$0xff]  }
 0x3f5   :  { %1067 = vmatpush1.bf16.msra.mxu0 %v1891_v12  ;;  %1108 = vmatpush1.bf16.msra.mxu1 %v1893_v13  ;;  %v2298_v12 = vld [vmem:[#allocation3 + $0x124] ss:$16 sps:$4 sm:$0xff]   ;;  %v2301_v13 = vld [vmem:[#allocation3 + $0x12c] ss:$16 sps:$4 sm:$0xff]  }
 0x3f6   :  { %1068 = vmatprep.subr.bf16.mxu0 %v1896_v14  ;;  %1109 = vmatprep.subr.bf16.mxu1 %v1899_v15 }
 0x3f7   :  { %1098 = vmatprep.mubr.bf16.mxu0 %v2492_v59  ;;  %1139 = vmatprep.mubr.bf16.mxu1 %v2492_v59 }
 0x3f9   :  { %1069 = vmatpush1.bf16.msra.mxu0 %v1903_v16  ;;  %1110 = vmatpush1.bf16.msra.mxu1 %v1907_v17  ;;  %v2497_v16 = vld [vmem:[#allocation13_spill] sm:$0xff] }
 0x3fa   :  { %1070 = vmatprep.subr.bf16.mxu0 %v1911_v18  ;;  %1111 = vmatprep.subr.bf16.mxu1 %v1918_v20 }
 0x3fd   :  { %1071 = vmatpush1.bf16.msra.mxu0 %v1920_v21  ;;  %1112 = vmatpush1.bf16.msra.mxu1 %v1924_v22  ;;  %v2498_v22 = vld [vmem:[#allocation15_spill] sm:$0xff] }
 0x3fe   :  { %1072 = vmatprep.subr.bf16.mxu0 %v1928_v23  ;;  %1113 = vmatprep.subr.bf16.mxu1 %v1930_v24 }
 0x401   :  { %1073 = vmatpush1.bf16.msra.mxu0 %v1934_v25  ;;  %1114 = vmatpush1.bf16.msra.mxu1 %v1938_v26  ;;  %v2499_v26 = vld [vmem:[#allocation14_spill] sm:$0xff] }
 0x402   :  { %1074 = vmatprep.subr.bf16.mxu0 %v1942_v27  ;;  %1115 = vmatprep.subr.bf16.mxu1 %v1944_v28 }
 0x405   :  { %1075 = vmatpush1.bf16.msra.mxu0 %v1951_v30  ;;  %1116 = vmatpush1.bf16.msra.mxu1 %v1953_v31 }
 0x406   :  { %1076 = vmatprep.subr.bf16.mxu0 %v1957_v32  ;;  %1117 = vmatprep.subr.bf16.mxu1 %v1961_v33  ;;  %v2500_v32 = vld [vmem:[#allocation16_spill] sm:$0xff] }
 0x409   :  { %1077 = vmatpush1.bf16.msra.mxu0 %v1965_v34  ;;  %1118 = vmatpush1.bf16.msra.mxu1 %v1967_v35 }
 0x40a   :  { %1078 = vmatprep.subr.bf16.mxu0 %v1971_v36  ;;  %1119 = vmatprep.subr.bf16.mxu1 %v1975_v37 }
 0x40d   :  { %1079 = vmatpush1.bf16.msra.mxu0 %v1982_v39  ;;  %1120 = vmatpush1.bf16.msra.mxu1 %v1984_v40 }
 0x40e   :  { %1080 = vmatprep.subr.bf16.mxu0 %v1986_v41  ;;  %1121 = vmatprep.subr.bf16.mxu1 %v1988_v42 }
 0x411   :  { %1081 = vmatpush1.bf16.msra.mxu0 %v1998_v43  ;;  %1122 = vmatpush1.bf16.msra.mxu1 %v2000_v44 }
 0x412   :  { %1175 = vmatprep.subr.bf16.mxu0 %v2298_v12  ;;  %1216 = vmatprep.subr.bf16.mxu1 %v2301_v13 }
 0x4b4   :  { %v991_v14 = vpop.f32.mrf.mxu0  ;;  %v1032_v15 = vpop.f32.mrf.mxu1 }
 0x4b5   :  { %v1039_v17 = vadd.f32 %v991_v14, %v2497_v16  ;;  %v1041_v27 = vadd.f32 %v1032_v15, %v2499_v26  ;;  %v2365_v14 = vld [vmem:[#allocation3 + $0xa8] ss:$16 sps:$4 sm:$0xff]   ;;  %v2368_v15 = vld [vmem:[#allocation3 + $0x84] ss:$16 sps:$4 sm:$0xff]   ;;  %v2371_v16 = vld [vmem:[#allocation3 + $0x8c] ss:$16 sps:$4 sm:$0xff]  }
 0x4b6   :  { %v993_v18 = vpop.f32.mrf.mxu0  ;;  %v1034_v20 = vpop.f32.mrf.mxu1 }
 0x4b7   :  { %v1043_v21 = vmul.f32 0.5, %v1039_v17  ;;  %v1040_v23 = vadd.f32 %v993_v18, %v2498_v22  ;;  %v1042_v33 = vadd.f32 %v1034_v20, %v2500_v32  ;;  %v2374_v17 = vld [vmem:[#allocation3 + $0x80] ss:$16 sps:$4 sm:$0xff]   ;;  %v2377_v18 = vld [vmem:[#allocation3 + $0x88] ss:$16 sps:$4 sm:$0xff]  }
 0x4b8   :  { %v995_v24 = vpop.f32.mrf.mxu0  ;;  %v1036_v25 = vpop.f32.mrf.mxu1 }
 0x4b9   :  { %1726 = vtanh.f32 %v1043_v21  ;;  %v1047_v28 = vmul.f32 0.5, %v1040_v23  ;;  %v1052_v34 = vmul.f32 0.5, %v1042_v33  ;;  %v2501_v21 = vld [vmem:[#allocation17_spill] sm:$0xff] }
 0x4ba   :  { %v996_v30 = vpop.f32.mrf.mxu0  ;;  %v1037_v31 = vpop.f32.mrf.mxu1 }
 0x4bb   :  { %1728 = vtanh.f32 %v1047_v28 }
 0x4bc   :  { %1730 = vtanh.f32 %v1041_v27 }
 0x4bd   :  { %1732 = vtanh.f32 %v1052_v34 }
 0x4c6   :  { %v1727_v35 = vpop.eup %1726 }
 0x4c7   :  { %v1045_v8 = vmul.f32 0.5, %v1727_v35 }
 0x4c8   :  { %v1729_v60 = vpop.eup %1728 }
 0x4c9   :  { %v1046_v46 = vadd.f32 0.5, %v1045_v8  ;;  %v1049_v52 = vmul.f32 0.5, %v1729_v60  ;;  %v1731_v53 = vpop.eup %1730 }
 0x4ca   :  { %v1733_v56 = vpop.eup %1732 }
 0x4cb   :  { %v1050_v54 = vadd.f32 0.5, %v1049_v52  ;;  %v1057_v0 = vmul.f32 %v1731_v53, %v1046_v46  ;;  %v1054_v58 = vmul.f32 0.5, %v1733_v56 }
 0x4cd   :  { %v1056_v62 = vmul.f32 %v1050_v54, %v2263_v38  ;;  %v1055_v3 = vadd.f32 0.5, %v1054_v58  ;;  %v2344_v38 = vld [vmem:[#allocation3 + $0xc4] ss:$16 sps:$4 sm:$0xff]  }
 0x4cf   :  { %v2309_v47 = vadd.f32 %v1057_v0, %v1056_v62 }
 0x4d1   :  { %1734 = vtanh.f32 %v2309_v47 }
 0x4de   :  { %v1735_v7 = vpop.eup %1734 }
 0x4df   :  { %v1060_v10 = vmul.f32 %v1735_v7, %v1055_v3  ;;  %v1792_v3 = vld [vmem:[#allocation3 + $0x60] ss:$16 sps:$4 sm:$0xff]   ;;  %v1793_v7 = vld [vmem:[#allocation3 + $0x68] ss:$16 sps:$4 sm:$0xff]  }
 0x4e1   :  { %v1065_v11 = vpack.c.bf16 %v1060_v10, %v1060_v10  ;;  %v1794_v10 = vld [vmem:[#allocation3 + $0x44] ss:$16 sps:$4 sm:$0xff]  }
 0x4e3   :  { %1099 = vmatmul.mubr.bf16.vlgmr.msra.gmra.mxu0 %v1065_v11  ;;  %1140 = vmatmul.mubr.bf16.vlgmr.msra.gmra.mxu1 %v1065_v11  ;;  %v1795_v11 = vld [vmem:[#allocation3 + $0x4c] ss:$16 sps:$4 sm:$0xff]  }
 0x4e4   :  { %1176 = vmatpush1.bf16.msra.mxu0 %v2312_v9  ;;  %1217 = vmatpush1.bf16.msra.mxu1 %v2315_v50 }
 0x4e5   :  { %1177 = vmatprep.subr.bf16.mxu0 %v2318_v51  ;;  %1218 = vmatprep.subr.bf16.mxu1 %v2321_v29 }
 0x4e6   :  { %1207 = vmatprep.mubr.bf16.mxu0 %v2492_v59  ;;  %1248 = vmatprep.mubr.bf16.mxu1 %v2492_v59 }
 0x4e8   :  { %1178 = vmatpush1.bf16.msra.mxu0 %v2326_v57  ;;  %1219 = vmatpush1.bf16.msra.mxu1 %v2329_v1 }
 0x4e9   :  { %1179 = vmatprep.subr.bf16.mxu0 %v2332_v5  ;;  %1220 = vmatprep.subr.bf16.mxu1 %v2335_v4 }
 0x4ec   :  { %1180 = vmatpush1.bf16.msra.mxu0 %v2338_v55  ;;  %1221 = vmatpush1.bf16.msra.mxu1 %v2341_v61 }
 0x4ed   :  { %1181 = vmatprep.subr.bf16.mxu0 %v2344_v38  ;;  %1222 = vmatprep.subr.bf16.mxu1 %v2347_v2 }
 0x4f0   :  { %1182 = vmatpush1.bf16.msra.mxu0 %v2350_v19  ;;  %1223 = vmatpush1.bf16.msra.mxu1 %v2353_v63 }
 0x4f1   :  { %1183 = vmatprep.subr.bf16.mxu0 %v2356_v49  ;;  %1224 = vmatprep.subr.bf16.mxu1 %v2359_v48 }
 0x4f4   :  { %1184 = vmatpush1.bf16.msra.mxu0 %v2362_v45  ;;  %1225 = vmatpush1.bf16.msra.mxu1 %v2365_v14 }
 0x4f5   :  { %1185 = vmatprep.subr.bf16.mxu0 %v2368_v15  ;;  %1226 = vmatprep.subr.bf16.mxu1 %v2371_v16 }
 0x4f8   :  { %1186 = vmatpush1.bf16.msra.mxu0 %v2374_v17  ;;  %1227 = vmatpush1.bf16.msra.mxu1 %v2377_v18 }
 0x4f9   :  { %1187 = vmatprep.subr.bf16.mxu0 %v1971_v36  ;;  %1228 = vmatprep.subr.bf16.mxu1 %v1975_v37 }
 0x4fc   :  { %1188 = vmatpush1.bf16.msra.mxu0 %v1982_v39  ;;  %1229 = vmatpush1.bf16.msra.mxu1 %v1984_v40  ;;  %v2502_v40 = vld [vmem:[#allocation19_spill] sm:$0xff] }
 0x4fd   :  { %1189 = vmatprep.subr.bf16.mxu0 %v1986_v41  ;;  %1230 = vmatprep.subr.bf16.mxu1 %v1988_v42  ;;  %v2503_v42 = vld [vmem:[#allocation18_spill] sm:$0xff] }
 0x500   :  { %1190 = vmatpush1.bf16.msra.mxu0 %v1998_v43  ;;  %1231 = vmatpush1.bf16.msra.mxu1 %v2000_v44 }
 0x501   :  { %1284 = vmatprep.subr.bf16.mxu0 %v2298_v12  ;;  %1325 = vmatprep.subr.bf16.mxu1 %v2301_v13  ;;  %v2504_v12 = vld [vmem:[#allocation20_spill] sm:$0xff] }
 0x5a3   :  { %v1100_v20 = vpop.f32.mrf.mxu0  ;;  %v1141_v36 = vpop.f32.mrf.mxu1 }
 0x5a4   :  { %v1148_v37 = vadd.f32 %v1100_v20, %v2501_v21  ;;  %v1150_v43 = vadd.f32 %v1141_v36, %v2503_v42 }
 0x5a5   :  { %v1102_v22 = vpop.f32.mrf.mxu0  ;;  %v1143_v39 = vpop.f32.mrf.mxu1 }
 0x5a6   :  { %v1152_v23 = vmul.f32 0.5, %v1148_v37  ;;  %v1149_v24 = vadd.f32 %v1102_v22, %v2502_v40  ;;  %v1151_v13 = vadd.f32 %v1143_v39, %v2504_v12  ;;  %v1846_v12 = vmov 0.0  }
 0x5a7   :  { %v1104_v41 = vpop.f32.mrf.mxu0  ;;  %v1145_v25 = vpop.f32.mrf.mxu1 }
 0x5a8   :  { %1736 = vtanh.f32 %v1152_v23  ;;  %v1156_v26 = vmul.f32 0.5, %v1149_v24  ;;  %v1161_v28 = vmul.f32 0.5, %v1151_v13  ;;  %v1679_v13 = vld [vmem:[%s2468_s3 + $0x30] sm:$0xff]  }
 0x5a9   :  { %v1105_v44 = vpop.f32.mrf.mxu0  ;;  %v1146_v27 = vpop.f32.mrf.mxu1 }
 0x5aa   :  { %1738 = vtanh.f32 %v1156_v26  ;;  %v1678_v27 = vld [vmem:[%s2468_s3 + $0x38] sm:$0xff]  }
 0x5ab   :  { %1740 = vtanh.f32 %v1150_v43 }
 0x5ac   :  { %1742 = vtanh.f32 %v1161_v28  ;;  %v1680_v28 = vld [vmem:[%s2468_s3 + $0x28] sm:$0xff]  }
 0x5b5   :  { %v1737_v30 = vpop.eup %1736 }
 0x5b6   :  { %v1154_v31 = vmul.f32 0.5, %v1737_v30  ;;  %v1681_v30 = vld [vmem:[%s2468_s3 + $0x20] sm:$0xff]  }
 0x5b7   :  { %v1739_v32 = vpop.eup %1738 }
 0x5b8   :  { %v1155_v33 = vadd.f32 0.5, %v1154_v31  ;;  %v1158_v34 = vmul.f32 0.5, %v1739_v32  ;;  %v1741_v35 = vpop.eup %1740  ;;  %v1682_v31 = vld [vmem:[%s2468_s3 + $0x18] sm:$0xff]   ;;  %v1683_v32 = vld [vmem:[%s2468_s3 + $0x10] sm:$0xff]  }
 0x5b9   :  { %v1743_v53 = vpop.eup %1742 }
 0x5ba   :  { %v1159_v8 = vadd.f32 0.5, %v1158_v34  ;;  %v1166_v60 = vmul.f32 %v1741_v35, %v1155_v33  ;;  %v1163_v54 = vmul.f32 0.5, %v1743_v53  ;;  %v1684_v33 = vld [vmem:[%s2468_s3 + $0x8] sm:$0xff]   ;;  %v1685_v34 = vld [vmem:[%s2468_s3] sm:$0xff]  }
 0x5bc   :  { %v1165_v46 = vmul.f32 %v1159_v8, %v2309_v47  ;;  %v1164_v0 = vadd.f32 0.5, %v1163_v54  ;;  %v1791_v47 = vld [vmem:[#allocation3 + $0x6c] ss:$16 sps:$4 sm:$0xff]  }
 0x5be   :  { %v2395_v52 = vadd.f32 %v1166_v60, %v1165_v46  ;;  %v2509_v60 = vld [vmem:[#allocation25_spill] sm:$0xff] }
 0x5c0   :  { %1744 = vtanh.f32 %v2395_v52 }
 0x5cd   :  { %v1745_v62 = vpop.eup %1744 }
 0x5ce   :  { %v1169_v56 = vmul.f32 %v1745_v62, %v1164_v0 }
 0x5d0   :  { %v1174_v58 = vpack.c.bf16 %v1169_v56, %v1169_v56 }
 0x5d2   :  { %1208 = vmatmul.mubr.bf16.vlgmr.msra.gmra.mxu0 %v1174_v58  ;;  %1249 = vmatmul.mubr.bf16.vlgmr.msra.gmra.mxu1 %v1174_v58  ;;  %v2510_v58 = vld [vmem:[#allocation26_spill] sm:$0xff] }
 0x5d3   :  { %1285 = vmatpush1.bf16.msra.mxu0 %v2312_v9  ;;  %1326 = vmatpush1.bf16.msra.mxu1 %v2315_v50  ;;  %v1796_v9 = vld [vmem:[#allocation3 + $0x40] ss:$16 sps:$4 sm:$0xff]   ;;  %v1797_v50 = vld [vmem:[#allocation3 + $0x48] ss:$16 sps:$4 sm:$0xff]  }
 0x5d4   :  { %1286 = vmatprep.subr.bf16.mxu0 %v2318_v51  ;;  %1327 = vmatprep.subr.bf16.mxu1 %v2321_v29 }
 0x5d5   :  { %1316 = vmatprep.mubr.bf16.mxu0 %v2492_v59  ;;  %1357 = vmatprep.mubr.bf16.mxu1 %v2492_v59  ;;  %v1790_v59 = vld [vmem:[#allocation3 + $0x64] ss:$16 sps:$4 sm:$0xff]  }
 0x5d7   :  { %1287 = vmatpush1.bf16.msra.mxu0 %v2326_v57  ;;  %1328 = vmatpush1.bf16.msra.mxu1 %v2329_v1  ;;  %v2505_v57 = vld [vmem:[#allocation21_spill] sm:$0xff] }
 0x5d8   :  { %1288 = vmatprep.subr.bf16.mxu0 %v2332_v5  ;;  %1329 = vmatprep.subr.bf16.mxu1 %v2335_v4 }
 0x5db   :  { %1289 = vmatpush1.bf16.msra.mxu0 %v2338_v55  ;;  %1330 = vmatpush1.bf16.msra.mxu1 %v2341_v61  ;;  %v2506_v61 = vld [vmem:[#allocation23_spill] sm:$0xff] }
 0x5dc   :  { %1290 = vmatprep.subr.bf16.mxu0 %v2344_v38  ;;  %1331 = vmatprep.subr.bf16.mxu1 %v2347_v2 }
 0x5df   :  { %1291 = vmatpush1.bf16.msra.mxu0 %v2350_v19  ;;  %1332 = vmatpush1.bf16.msra.mxu1 %v2353_v63  ;;  %v2507_v63 = vld [vmem:[#allocation22_spill] sm:$0xff] }
 0x5e0   :  { %1292 = vmatprep.subr.bf16.mxu0 %v2356_v49  ;;  %1333 = vmatprep.subr.bf16.mxu1 %v2359_v48 }
 0x5e3   :  { %1293 = vmatpush1.bf16.msra.mxu0 %v2362_v45  ;;  %1334 = vmatpush1.bf16.msra.mxu1 %v2365_v14 }
 0x5e4   :  { %1294 = vmatprep.subr.bf16.mxu0 %v2368_v15  ;;  %1335 = vmatprep.subr.bf16.mxu1 %v2371_v16  ;;  %v2508_v15 = vld [vmem:[#allocation24_spill] sm:$0xff] }
 0x5e7   :  { %1295 = vmatpush1.bf16.msra.mxu0 %v2374_v17  ;;  %1336 = vmatpush1.bf16.msra.mxu1 %v2377_v18 }
 0x5e8   :  { %1296 = vmatprep.subr.bf16.mxu0 %v1790_v59  ;;  %1337 = vmatprep.subr.bf16.mxu1 %v1791_v47 }
 0x5eb   :  { %1297 = vmatpush1.bf16.msra.mxu0 %v1792_v3  ;;  %1338 = vmatpush1.bf16.msra.mxu1 %v1793_v7 }
 0x5ec   :  { %1298 = vmatprep.subr.bf16.mxu0 %v1794_v10  ;;  %1339 = vmatprep.subr.bf16.mxu1 %v1795_v11  ;;  %v2511_v10 = vld [vmem:[#allocation27_spill] sm:$0xff] }
 0x5ef   :  { %1299 = vmatpush1.bf16.msra.mxu0 %v1796_v9  ;;  %1340 = vmatpush1.bf16.msra.mxu1 %v1797_v50 }
 0x5f0   :  { %1587 = vmatprep.subr.bf16.mxu0 %v1846_v12 }
 0x692   :  { %v1209_v51 = vpop.f32.mrf.mxu0  ;;  %v1250_v29 = vpop.f32.mrf.mxu1 }
 0x693   :  { %v1257_v1 = vadd.f32 %v1209_v51, %v2505_v57  ;;  %v1259_v49 = vadd.f32 %v1250_v29, %v2507_v63 }
 0x694   :  { %v1211_v5 = vpop.f32.mrf.mxu0  ;;  %v1252_v4 = vpop.f32.mrf.mxu1 }
 0x695   :  { %v1261_v55 = vmul.f32 0.5, %v1257_v1  ;;  %v1258_v38 = vadd.f32 %v1211_v5, %v2506_v61  ;;  %v1260_v16 = vadd.f32 %v1252_v4, %v2508_v15 }
 0x696   :  { %v1213_v2 = vpop.f32.mrf.mxu0  ;;  %v1254_v19 = vpop.f32.mrf.mxu1 }
 0x697   :  { %1746 = vtanh.f32 %v1261_v55  ;;  %v1265_v48 = vmul.f32 0.5, %v1258_v38  ;;  %v1270_v17 = vmul.f32 0.5, %v1260_v16 }
 0x698   :  { %v1214_v45 = vpop.f32.mrf.mxu0  ;;  %v1255_v14 = vpop.f32.mrf.mxu1 }
 0x699   :  { %1748 = vtanh.f32 %v1265_v48  ;;  %v1569_v45 = vld [vmem:[%s2469_s4] ss:$0 sm:$0xff] }
 0x69a   :  { %1750 = vtanh.f32 %v1259_v49 }
 0x69b   :  { %1752 = vtanh.f32 %v1270_v17 }
 0x6a4   :  { %v1747_v18 = vpop.eup %1746 }
 0x6a5   :  { %v1263_v20 = vmul.f32 0.5, %v1747_v18 }
 0x6a6   :  { %v1749_v36 = vpop.eup %1748 }
 0x6a7   :  { %v1264_v21 = vadd.f32 0.5, %v1263_v20  ;;  %v1267_v37 = vmul.f32 0.5, %v1749_v36  ;;  %v1751_v22 = vpop.eup %1750 }
 0x6a8   :  { %v1753_v41 = vpop.eup %1752 }
 0x6a9   :  { %v1268_v39 = vadd.f32 0.5, %v1267_v37  ;;  %v1275_v23 = vmul.f32 %v1751_v22, %v1264_v21  ;;  %v1272_v25 = vmul.f32 0.5, %v1753_v41 }
 0x6ab   :  { %v1274_v40 = vmul.f32 %v1268_v39, %v2395_v52  ;;  %v1273_v42 = vadd.f32 0.5, %v1272_v25 }
 0x6ad   :  { %v2427_v24 = vadd.f32 %v1275_v23, %v1274_v40 }
 0x6af   :  { %1754 = vtanh.f32 %v2427_v24 }
 0x6bc   :  { %v1755_v43 = vpop.eup %1754 }
 0x6bd   :  { %v1278_v26 = vmul.f32 %v1755_v43, %v1273_v42 }
 0x6bf   :  { %v1283_v44 = vpack.c.bf16 %v1278_v26, %v1278_v26 }
 0x6c1   :  { %1317 = vmatmul.mubr.bf16.vlgmr.msra.gmra.mxu0 %v1283_v44  ;;  %1358 = vmatmul.mubr.bf16.vlgmr.msra.gmra.mxu1 %v1283_v44 }
 0x6c2   :  { %1588 = vmatpush3.bf16.msra.mxu0 %v1678_v27  ;;  %1603 = vmatprep.mubr.msk.bf16.mxu0 %vm1847_vm1, %v1846_v12 }
 0x6c3   :  { %1589 = vmatprep.subr.bf16.mxu0 %v1846_v12 }
 0x6c6   :  { %1590 = vmatpush3.bf16.msra.mxu0 %v1679_v13 }
 0x6c7   :  { %1591 = vmatprep.subr.bf16.mxu0 %v1846_v12 }
 0x6ca   :  { %1592 = vmatpush3.bf16.msra.mxu0 %v1680_v28 }
 0x6cb   :  { %1593 = vmatprep.subr.bf16.mxu0 %v1846_v12 }
 0x6ce   :  { %1594 = vmatpush3.bf16.msra.mxu0 %v1681_v30 }
 0x6cf   :  { %1595 = vmatprep.subr.bf16.mxu0 %v1846_v12 }
 0x6d2   :  { %1596 = vmatpush3.bf16.msra.mxu0 %v1682_v31 }
 0x6d3   :  { %1597 = vmatprep.subr.bf16.mxu0 %v1846_v12 }
 0x6d6   :  { %1598 = vmatpush3.bf16.msra.mxu0 %v1683_v32 }
 0x6d7   :  { %1599 = vmatprep.subr.bf16.mxu0 %v1846_v12 }
 0x6da   :  { %1600 = vmatpush3.bf16.msra.mxu0 %v1684_v33 }
 0x6db   :  { %1601 = vmatprep.subr.bf16.mxu0 %v1846_v12 }
 0x6de   :  { %1602 = vmatpush3.bf16.msra.mxu0 %v1685_v34 }
 0x781   :  { %v1318_v35 = vpop.f32.mrf.mxu0  ;;  %v1359_v8 = vpop.f32.mrf.mxu1 }
 0x782   :  { %v1366_v46 = vadd.f32 %v1318_v35, %v2509_v60  ;;  %v1368_v59 = vadd.f32 %v1359_v8, %v2510_v58 }
 0x783   :  { %v1320_v52 = vpop.f32.mrf.mxu0  ;;  %v1361_v53 = vpop.f32.mrf.mxu1 }
 0x784   :  { %v1370_v54 = vmul.f32 0.5, %v1366_v46  ;;  %v1367_v0 = vadd.f32 %v1320_v52, %v2127_v6  ;;  %v1369_v11 = vadd.f32 %v1361_v53, %v2511_v10 }
 0x785   :  { %v1322_v62 = vpop.f32.mrf.mxu0  ;;  %v1363_v56 = vpop.f32.mrf.mxu1 }
 0x786   :  { %1756 = vtanh.f32 %v1370_v54  ;;  %v1374_v47 = vmul.f32 0.5, %v1367_v0  ;;  %v1379_v9 = vmul.f32 0.5, %v1369_v11 }
 0x787   :  { %v1323_v3 = vpop.f32.mrf.mxu0  ;;  %v1364_v7 = vpop.f32.mrf.mxu1 }
 0x788   :  { %1758 = vtanh.f32 %v1374_v47 }
 0x789   :  { %1760 = vtanh.f32 %v1368_v59 }
 0x78a   :  { %1762 = vtanh.f32 %v1379_v9 }
 0x793   :  { %v1757_v50 = vpop.eup %1756 }
 0x794   :  { %v1372_v51 = vmul.f32 0.5, %v1757_v50 }
 0x795   :  { %v1759_v29 = vpop.eup %1758 }
 0x796   :  { %v1373_v57 = vadd.f32 0.5, %v1372_v51  ;;  %v1376_v1 = vmul.f32 0.5, %v1759_v29  ;;  %v1761_v6 = vpop.eup %1760 }
 0x797   :  { %v1763_v38 = vpop.eup %1762 }
 0x798   :  { %v1377_v5 = vadd.f32 0.5, %v1376_v1  ;;  %v1384_v4 = vmul.f32 %v1761_v6, %v1373_v57  ;;  %v1381_v2 = vmul.f32 0.5, %v1763_v38 }
 0x79a   :  { %v1383_v55 = vmul.f32 %v1377_v5, %v2427_v24  ;;  %v1382_v19 = vadd.f32 0.5, %v1381_v2 }
 0x79c   :  { %v1385_v61 = vadd.f32 %v1384_v4, %v1383_v55 }
 0x79e   :  { %1764 = vtanh.f32 %v1385_v61 }
 0x7ab   :  { %v1765_v63 = vpop.eup %1764 }
 0x7ac   :  { %v1387_v49 = vmul.f32 %v1765_v63, %v1382_v19 }
 0x7ae   :  { %v1388_v48 = vpack.c.bf16 %v1387_v49, %v1387_v49 }
 0x7b0   :  { %1604 = vmatmul.mubr.bf16.vlgmr.msra.gmra.mxu0 %v1388_v48 }
 0x870   :  { %v1494_v14 = vpop.f32.mrf.mxu0 }
 0x871   :  { %v1495_v15 = vadd.f32 %v1569_v45, %v1494_v14 }
 0x872   :  { %v1605_v16 = vpop.f32.mrf.mxu0 }
 0x873   :  { %1501 = vst.msk [vmem:[#allocation6] sm:$0xff] %vm1500_vm2, %v1495_v15 }
 0x874   :  { %v1497_v17 = vpop.f32.mrf.mxu0 }
 0x875   :  { %1829 = shalt.err (!%p1826_p9)
}
 0x876   :  { %1511 = dma.vmem_to_hbm [thread:$0]  %s1509_s1, 128, %s2470_s5, [#allocation5]   ;;  %v1606_v18 = vpop.f32.mrf.mxu0 }
 0x877   :  { %1840 = dma.done.wait [#allocation5], 128  }
 0x878   :  { %1841 = vsyncadd [#allocation5], 4294967168 }
 0x879   :  { %1515 = vsyncpa [#allocation4], 1 }
 0x87a   :  { %1516 = vsyncpa [#allocation5], 1 }

</bundles_post_ra>
